<compile_context>
chip_gen: v5e
topology: v5e:2x2
jax: 0.10.0
libtpu: 0.0.40
codegen_flags: <defaults>
</compile_context>

<pallas_src>
import functools

import jax
import jax.numpy as jnp
from jax.experimental import pallas as pl
from jax.experimental.pallas import tpu as pltpu

IN_DIM = 28 * 28       # 784
IN_PAD = 896           # 7 * 128  (lane-aligned K for layer 1)
H1 = 256
H2 = 128
OUT_DIM = 10
OUT_PAD = 128          # lane-dense output slab; real logits are [:, :10]


def _fcnn_kernel(x_ref, w1_ref, b1_ref, w2_ref, b2_ref, w3_ref, b3_ref, o_ref):
    # Layer 1: (TB, 896)bf16 @ (896, 256)bf16 -> f32 acc, bias + ReLU in f32
    h1 = jnp.dot(x_ref[...], w1_ref[...], preferred_element_type=jnp.float32)
    h1 = jnp.maximum(h1 + b1_ref[...], 0.0)
    # Layer 2: (TB, 256) @ (256, 128)
    h2 = jnp.dot(h1.astype(jnp.bfloat16), w2_ref[...],
                 preferred_element_type=jnp.float32)
    h2 = jnp.maximum(h2 + b2_ref[...], 0.0)
    # Layer 3: (TB, 128) @ (128, 128-padded)
    out = jnp.dot(h2.astype(jnp.bfloat16), w3_ref[...],
                  preferred_element_type=jnp.float32)
    o_ref[...] = (out + b3_ref[...]).astype(o_ref.dtype)


@functools.partial(jax.jit, static_argnames=("batch_tile",))
def fcnn_forward(x, params, batch_tile=256):
    """x: (B, 1, 28, 28) or (B, 28, 28) float32 -> (B, 10) float32."""
    w1, b1, w2, b2, w3, b3 = params
    B = x.shape[0]
    x_flat = x.reshape(B, -1).astype(jnp.float32)            # nn.Flatten()
    assert x_flat.shape[1] == IN_DIM

    # Adapt the batch tile: never larger than the (128-rounded) batch itself.
    tb = min(batch_tile, pl.cdiv(B, 128) * 128)
    tb = max(tb, 128)
    B_pad = pl.cdiv(B, tb) * tb

    # Pad batch to a multiple of the tile and features 784 -> 896 (zeros),
    # cast activations to bf16 for the MXU (accumulation stays f32 in-kernel).
    x_p = jnp.pad(x_flat, ((0, B_pad - B), (0, IN_PAD - IN_DIM))).astype(jnp.bfloat16)

    # Weights: bf16, zero rows for padded input columns, zero cols for padded
    # output lanes. Biases stay f32 (elementwise math is done in f32).
    w1_p = jnp.pad(w1, ((0, IN_PAD - IN_DIM), (0, 0))).astype(jnp.bfloat16)
    w2_b = w2.astype(jnp.bfloat16)
    w3_p = jnp.pad(w3, ((0, 0), (0, OUT_PAD - OUT_DIM))).astype(jnp.bfloat16)
    b1r = b1.reshape(1, H1).astype(jnp.float32)
    b2r = b2.reshape(1, H2).astype(jnp.float32)
    b3r = jnp.pad(b3, (0, OUT_PAD - OUT_DIM)).reshape(1, OUT_PAD).astype(jnp.float32)

    grid = (B_pad // tb,)

    out = pl.pallas_call(
        _fcnn_kernel,
        out_shape=jax.ShapeDtypeStruct((B_pad, OUT_PAD), jnp.float32),
        grid=grid,
        in_specs=[
            # per-grid-step batch tile of the (padded) flattened input
            pl.BlockSpec((tb, IN_PAD), lambda i: (i, 0)),
            # weights / biases: full arrays, same block every step (stay resident)
            pl.BlockSpec((IN_PAD, H1), lambda i: (0, 0)),
            pl.BlockSpec((1, H1), lambda i: (0, 0)),
            pl.BlockSpec((H1, H2), lambda i: (0, 0)),
            pl.BlockSpec((1, H2), lambda i: (0, 0)),
            pl.BlockSpec((H2, OUT_PAD), lambda i: (0, 0)),
            pl.BlockSpec((1, OUT_PAD), lambda i: (0, 0)),
        ],
        out_specs=pl.BlockSpec((tb, OUT_PAD), lambda i: (i, 0)),
        compiler_params=pltpu.CompilerParams(
            dimension_semantics=("parallel",),   # batch tiles shard across TCs (v7x)
            vmem_limit_bytes=64 << 20,           # headroom for large batch tiles
        ),
    )(x_p, w1_p, b1r, w2_b, b2r, w3_p, b3r)

    # Strip batch padding and the 118 padded output lanes.
    return out[:B, :OUT_DIM]


def init_params(key):
    """Deterministic init mimicking PyTorch nn.Linear default (U[-1/sqrt(fan_in), ...])."""
    ks = jax.random.split(key, 6)

    def lin(kw, kb, fan_in, fan_out):
        bound = 1.0 / jnp.sqrt(fan_in)
        w = jax.random.uniform(kw, (fan_in, fan_out), jnp.float32, -bound, bound)
        b = jax.random.uniform(kb, (fan_out,), jnp.float32, -bound, bound)
        return w, b

    w1, b1 = lin(ks[0], ks[1], IN_DIM, H1)
    w2, b2 = lin(ks[2], ks[3], H1, H2)
    w3, b3 = lin(ks[4], ks[5], H2, OUT_DIM)
    return (w1, b1, w2, b2, w3, b3)


def _reference(x, params):
    """Pure-JAX f32 reference (matches the PyTorch module)."""
    w1, b1, w2, b2, w3, b3 = params
    h = x.reshape(x.shape[0], -1).astype(jnp.float32)
    h = jnp.maximum(h @ w1 + b1, 0.0)
    h = jnp.maximum(h @ w2 + b2, 0.0)
    return h @ w3 + b3


if __name__ == "__main__":
    key = jax.random.PRNGKey(0)
    k_x, k_x2, k_p = jax.random.split(key, 3)
    params = init_params(k_p)

    # Small MNIST-like batch (B not a multiple of the tile -> exercises batch padding
    # and the adaptive 128-row tile).
    B = 8
    x = jax.random.normal(k_x, (B, 1, 28, 28), jnp.float32)
    y = jax.block_until_ready(fcnn_forward(x, params))
    y_ref = _reference(x, params)
    assert y.shape == (B, 10)
    # bf16 matmul inputs with f32 accumulation -> loose tolerance vs pure-f32 reference.
    assert jnp.allclose(y, y_ref, atol=5e-2, rtol=5e-2), "mismatch vs JAX reference (small batch)"

    # Larger, non-multiple batch to exercise a multi-step grid (300 -> 2 tiles of 256).
    B2 = 300
    x2 = jax.random.normal(k_x2, (B2, 1, 28, 28), jnp.float32)
    y2 = jax.block_until_ready(fcnn_forward(x2, params))
    y2_ref = _reference(x2, params)
    assert y2.shape == (B2, 10)
    assert jnp.allclose(y2, y2_ref, atol=5e-2, rtol=5e-2), "mismatch vs JAX reference (large batch)"

    print("KERNEL_OK")
</pallas_src>

<mosaic_0001>
module attributes {stable_mosaic.version = 11 : i64} {
  func.func @_fcnn_kernel(%arg0: i32, %arg1: memref<128x896xbf16, #tpu.memory_space<vmem>>, %arg2: memref<896x256xbf16, #tpu.memory_space<vmem>>, %arg3: memref<1x256xf32, #tpu.memory_space<vmem>>, %arg4: memref<256x128xbf16, #tpu.memory_space<vmem>>, %arg5: memref<1x128xf32, #tpu.memory_space<vmem>>, %arg6: memref<128x128xbf16, #tpu.memory_space<vmem>>, %arg7: memref<1x128xf32, #tpu.memory_space<vmem>>, %arg8: memref<128x128xf32, #tpu.memory_space<vmem>>) attributes {dimension_semantics = [#tpu.dimension_semantics<parallel>], iteration_bounds = array<i64: 1>, scalar_prefetch = 0 : i64, scratch_operands = 0 : i64, tpu.core_type = #tpu.core_type<tc>, window_params = [{transform_indices = @transform_0, window_bounds = array<i64: 128, 896>}, {pipeline_mode = #tpu.pipeline_mode<synchronous>, transform_indices = @transform_1, window_bounds = array<i64: 896, 256>}, {pipeline_mode = #tpu.pipeline_mode<synchronous>, transform_indices = @transform_2, window_bounds = array<i64: 1, 256>}, {pipeline_mode = #tpu.pipeline_mode<synchronous>, transform_indices = @transform_3, window_bounds = array<i64: 256, 128>}, {pipeline_mode = #tpu.pipeline_mode<synchronous>, transform_indices = @transform_4, window_bounds = array<i64: 1, 128>}, {pipeline_mode = #tpu.pipeline_mode<synchronous>, transform_indices = @transform_5, window_bounds = array<i64: 128, 128>}, {pipeline_mode = #tpu.pipeline_mode<synchronous>, transform_indices = @transform_6, window_bounds = array<i64: 1, 128>}, {transform_indices = @transform_7, window_bounds = array<i64: 128, 128>}]} {
    %c0 = arith.constant 0 : index
    %c0_0 = arith.constant 0 : index
    %0 = vector.load %arg1[%c0, %c0_0] : memref<128x896xbf16, #tpu.memory_space<vmem>>, vector<128x896xbf16>
    %c0_1 = arith.constant 0 : index
    %c0_2 = arith.constant 0 : index
    %1 = vector.load %arg2[%c0_1, %c0_2] : memref<896x256xbf16, #tpu.memory_space<vmem>>, vector<896x256xbf16>
    %cst = arith.constant dense<0.000000e+00> : vector<128x256xf32>
    %2 = tpu.matmul %0, %1, %cst {dimension_numbers = #tpu.dot_dimension_numbers<[1], [0], [0], [1], [0, 0, 1, 1], [], []>} : vector<128x896xbf16>, vector<896x256xbf16>, vector<128x256xf32> -> vector<128x256xf32>
    %c0_3 = arith.constant 0 : index
    %c0_4 = arith.constant 0 : index
    %3 = vector.load %arg3[%c0_3, %c0_4] : memref<1x256xf32, #tpu.memory_space<vmem>>, vector<1x256xf32>
    %4 = vector.broadcast %3 : vector<1x256xf32> to vector<128x256xf32>
    %5 = arith.addf %2, %4 : vector<128x256xf32>
    %cst_5 = arith.constant 0.000000e+00 : f32
    %6 = vector.broadcast %cst_5 : f32 to vector<128x256xf32>
    %7 = arith.maximumf %5, %6 : vector<128x256xf32>
    %8 = arith.truncf %7 : vector<128x256xf32> to vector<128x256xbf16>
    %c0_6 = arith.constant 0 : index
    %c0_7 = arith.constant 0 : index
    %9 = vector.load %arg4[%c0_6, %c0_7] : memref<256x128xbf16, #tpu.memory_space<vmem>>, vector<256x128xbf16>
    %cst_8 = arith.constant dense<0.000000e+00> : vector<128x128xf32>
    %10 = tpu.matmul %8, %9, %cst_8 {dimension_numbers = #tpu.dot_dimension_numbers<[1], [0], [0], [1], [0, 0, 1, 1], [], []>} : vector<128x256xbf16>, vector<256x128xbf16>, vector<128x128xf32> -> vector<128x128xf32>
    %c0_9 = arith.constant 0 : index
    %c0_10 = arith.constant 0 : index
    %11 = vector.load %arg5[%c0_9, %c0_10] : memref<1x128xf32, #tpu.memory_space<vmem>>, vector<1x128xf32>
    %12 = vector.broadcast %11 : vector<1x128xf32> to vector<128x128xf32>
    %13 = arith.addf %10, %12 : vector<128x128xf32>
    %cst_11 = arith.constant 0.000000e+00 : f32
    %14 = vector.broadcast %cst_11 : f32 to vector<128x128xf32>
    %15 = arith.maximumf %13, %14 : vector<128x128xf32>
    %16 = arith.truncf %15 : vector<128x128xf32> to vector<128x128xbf16>
    %c0_12 = arith.constant 0 : index
    %c0_13 = arith.constant 0 : index
    %17 = vector.load %arg6[%c0_12, %c0_13] : memref<128x128xbf16, #tpu.memory_space<vmem>>, vector<128x128xbf16>
    %cst_14 = arith.constant dense<0.000000e+00> : vector<128x128xf32>
    %18 = tpu.matmul %16, %17, %cst_14 {dimension_numbers = #tpu.dot_dimension_numbers<[1], [0], [0], [1], [0, 0, 1, 1], [], []>} : vector<128x128xbf16>, vector<128x128xbf16>, vector<128x128xf32> -> vector<128x128xf32>
    %c0_15 = arith.constant 0 : index
    %c0_16 = arith.constant 0 : index
    %19 = vector.load %arg7[%c0_15, %c0_16] : memref<1x128xf32, #tpu.memory_space<vmem>>, vector<1x128xf32>
    %20 = vector.broadcast %19 : vector<1x128xf32> to vector<128x128xf32>
    %21 = arith.addf %18, %20 : vector<128x128xf32>
    %c0_17 = arith.constant 0 : index
    %c0_18 = arith.constant 0 : index
    %22 = vector.load %arg8[%c0_17, %c0_18] : memref<128x128xf32, #tpu.memory_space<vmem>>, vector<128x128xf32>
    tpu.vector_store %arg8[%c0_17, %c0_18], %21 {strides = array<i32>} : memref<128x128xf32, #tpu.memory_space<vmem>>, vector<128x128xf32>,
    return
  }
  func.func @transform_0(%arg0: i32) -> (i32, i32) {
    %c0_i32 = arith.constant 0 : i32
    %c0_i32_0 = arith.constant 0 : i32
    return %arg0, %c0_i32 : i32, i32
  }
  func.func @transform_1(%arg0: i32) -> (i32, i32) {
    %c0_i32 = arith.constant 0 : i32
    %c0_i32_0 = arith.constant 0 : i32
    %c0_i32_1 = arith.constant 0 : i32
    return %c0_i32, %c0_i32_0 : i32, i32
  }
  func.func @transform_2(%arg0: i32) -> (i32, i32) {
    %c0_i32 = arith.constant 0 : i32
    %c0_i32_0 = arith.constant 0 : i32
    %c0_i32_1 = arith.constant 0 : i32
    return %c0_i32, %c0_i32_0 : i32, i32
  }
  func.func @transform_3(%arg0: i32) -> (i32, i32) {
    %c0_i32 = arith.constant 0 : i32
    %c0_i32_0 = arith.constant 0 : i32
    %c0_i32_1 = arith.constant 0 : i32
    return %c0_i32, %c0_i32_0 : i32, i32
  }
  func.func @transform_4(%arg0: i32) -> (i32, i32) {
    %c0_i32 = arith.constant 0 : i32
    %c0_i32_0 = arith.constant 0 : i32
    %c0_i32_1 = arith.constant 0 : i32
    return %c0_i32, %c0_i32_0 : i32, i32
  }
  func.func @transform_5(%arg0: i32) -> (i32, i32) {
    %c0_i32 = arith.constant 0 : i32
    %c0_i32_0 = arith.constant 0 : i32
    %c0_i32_1 = arith.constant 0 : i32
    return %c0_i32, %c0_i32_0 : i32, i32
  }
  func.func @transform_6(%arg0: i32) -> (i32, i32) {
    %c0_i32 = arith.constant 0 : i32
    %c0_i32_0 = arith.constant 0 : i32
    %c0_i32_1 = arith.constant 0 : i32
    return %c0_i32, %c0_i32_0 : i32, i32
  }
  func.func @transform_7(%arg0: i32) -> (i32, i32) {
    %c0_i32 = arith.constant 0 : i32
    %c0_i32_0 = arith.constant 0 : i32
    return %arg0, %c0_i32 : i32, i32
  }
}

</mosaic_0001>

<bundles_post_ra>
// kernel: fcnn_forward.1
= control target key start
LH: loop header
LB: loop body
LE: loop exit
PB: predicated region body
PF: predicated region fallthrough
CT: control target
= control target key end

     0   :  { %s4854_s1 = inlined_call_operand.vmem [shape: bf16[896,256], index: 1, kind: input, shape index: {}]   ;;  %s4855_s0 = inlined_call_operand.vmem [shape: bf16[128,896], index: 0, kind: input, shape index: {}]   ;;  %s4856_s2 = inlined_call_operand.vmem [shape: f32[1,256], index: 2, kind: input, shape index: {}]   ;;  %s4857_s3 = inlined_call_operand.vmem [shape: bf16[256,128], index: 3, kind: input, shape index: {}]   ;;  %s4858_s4 = inlined_call_operand.vmem [shape: f32[1,128], index: 4, kind: input, shape index: {}]   ;;  %s4859_s5 = inlined_call_operand.vmem [shape: bf16[128,128], index: 5, kind: input, shape index: {}]   ;;  %s4860_s6 = inlined_call_operand.vmem [shape: f32[1,128], index: 6, kind: input, shape index: {}]   ;;  %s4861_s7 = inlined_call_operand.vmem [shape: f32[128,128], index: 7, kind: output, shape index: {}]  }
   0x1   :  { %v2463_v0 = vld [vmem:[%s4854_s1 + $0x70] sm:$0xf]  ;;  %v3020_v1 = vld [vmem:[%s4854_s1 + $0x74] sm:$0xf0]  ;;  %v2455_v2 = vld [vmem:[%s4854_s1 + $0x60] sm:$0xf] }
   0x2   :  { %v2464_v3 = vor.u32 %v3020_v1, %v2463_v0  ;;  %v3018_v4 = vld [vmem:[%s4854_s1 + $0x64] sm:$0xf0]  ;;  %v2447_v6 = vld [vmem:[%s4854_s1 + $0x50] sm:$0xf]  ;;  %v3016_v7 = vld [vmem:[%s4854_s1 + $0x54] sm:$0xf0] }
   0x3   :  { %v2456_v5 = vor.u32 %v3018_v4, %v2455_v2  ;;  %v2448_v8 = vor.u32 %v3016_v7, %v2447_v6  ;;  %v2439_v9 = vld [vmem:[%s4854_s1 + $0x40] sm:$0xf]  ;;  %v3014_v10 = vld [vmem:[%s4854_s1 + $0x44] sm:$0xf0]  ;;  %v2431_v12 = vld [vmem:[%s4854_s1 + $0x30] sm:$0xf] }
   0x4   :  { %3141 = vmatpush.bf16.msra.mxu1 %v2464_v3  ;;  %3142 = vmatpush.bf16.msra.mxu2 %v2464_v3  ;;  %v2440_v11 = vor.u32 %v3014_v10, %v2439_v9  ;;  %v3012_v13 = vld [vmem:[%s4854_s1 + $0x34] sm:$0xf0]  ;;  %v2423_v15 = vld [vmem:[%s4854_s1 + $0x20] sm:$0xf]  ;;  %v3010_v16 = vld [vmem:[%s4854_s1 + $0x24] sm:$0xf0] }
   0x5   :  { %3143 = vmatpush.bf16.msra.mxu3 %v2464_v3  ;;  %1056 = vmatpush.bf16.msra.mxu0 %v2464_v3  ;;  %v2432_v14 = vor.u32 %v3012_v13, %v2431_v12  ;;  %v2424_v17 = vor.u32 %v3010_v16, %v2423_v15  ;;  %v2415_v18 = vld [vmem:[%s4854_s1 + $0x10] sm:$0xf]  ;;  %v3008_v19 = vld [vmem:[%s4854_s1 + $0x14] sm:$0xf0]  ;;  %v2407_v21 = vld [vmem:[%s4854_s1] sm:$0xf] }
   0x6   :  { %v2416_v20 = vor.u32 %v3008_v19, %v2415_v18  ;;  %v3006_v22 = vld [vmem:[%s4854_s1 + $0x4] sm:$0xf0]  ;;  %v2239_v23 = vld [vmem:[%s4855_s0 + $0x70] sm:$0xf]  ;;  %v2966_v24 = vld [vmem:[%s4855_s0 + $0x88] sm:$0xf0] }
   0x7   :  { %v2527_v25 = vld [vmem:[%s4854_s1 + $0xf0] sm:$0xf]  ;;  %v3036_v26 = vld [vmem:[%s4854_s1 + $0xf4] sm:$0xf0]  ;;  %v2408_v31 = vor.u32 %v3006_v22, %v2407_v21  ;;  %v2295_v32 = vld [vmem:[%s4855_s0 + $0xe0] sm:$0xf]  ;;  %v3306_v44 = vor.u32 %v2966_v24, %v2239_v23 }
   0x8   :  { %3144 = vmatpush.bf16.msra.mxu1 %v2456_v5  ;;  %3145 = vmatpush.bf16.msra.mxu2 %v2456_v5  ;;  %v2591_v27 = vld [vmem:[%s4854_s1 + $0x170] sm:$0xf]  ;;  %v3052_v28 = vld [vmem:[%s4854_s1 + $0x174] sm:$0xf0]  ;;  %v2980_v33 = vld [vmem:[%s4855_s0 + $0xf8] sm:$0xf0]  ;;  %v2528_v35 = vor.u32 %v3036_v26, %v2527_v25 }
   0x9   :  { %3146 = vmatpush.bf16.msra.mxu3 %v2456_v5  ;;  %1057 = vmatpush.bf16.msra.mxu0 %v2456_v5  ;;  %v2655_v29 = vld [vmem:[%s4854_s1 + $0x1f0] sm:$0xf]  ;;  %v3068_v30 = vld [vmem:[%s4854_s1 + $0x1f4] sm:$0xf0]  ;;  %v2994_v36 = vld [vmem:[%s4855_s0 + $0x168] sm:$0xf0]  ;;  %v2592_v39 = vor.u32 %v3052_v28, %v2591_v27  ;;  %v3308_v45 = vor.u32 %v2980_v33, %v2295_v32 }
   0xa   :  { %v2351_v34 = vld [vmem:[%s4855_s0 + $0x150] sm:$0xf]  ;;  %v2519_v37 = vld [vmem:[%s4854_s1 + $0xe0] sm:$0xf]  ;;  %v3034_v38 = vld [vmem:[%s4854_s1 + $0xe4] sm:$0xf0]  ;;  %v2656_v40 = vor.u32 %v3068_v30, %v2655_v29 }
   0xb   :  { %v2583_v41 = vld [vmem:[%s4854_s1 + $0x160] sm:$0xf]  ;;  %v2719_v42 = vld [vmem:[%s4854_s1 + $0x270] sm:$0xf]  ;;  %v3084_v43 = vld [vmem:[%s4854_s1 + $0x274] sm:$0xf0]  ;;  %v3319_v49 = vor.u32 %v2994_v36, %v2351_v34  ;;  %v2520_v52 = vor.u32 %v3034_v38, %v2519_v37 }
   0xc   :  { %3147 = vmatpush.bf16.msra.mxu1 %v2448_v8  ;;  %3148 = vmatpush.bf16.msra.mxu2 %v2448_v8  ;;  %v3050_v46 = vld [vmem:[%s4854_s1 + $0x164] sm:$0xf0]  ;;  %v2647_v47 = vld [vmem:[%s4854_s1 + $0x1e0] sm:$0xf]  ;;  %v2952_v51 = vld [vmem:[%s4855_s0 + $0x18] sm:$0xf0]  ;;  %v2720_v55 = vor.u32 %v3084_v43, %v2719_v42 }
   0xd   :  { %3149 = vmatpush.bf16.msra.mxu3 %v2448_v8  ;;  %1058 = vmatpush.bf16.msra.mxu0 %v2448_v8  ;;  %v3066_v48 = vld [vmem:[%s4854_s1 + $0x1e4] sm:$0xf0]  ;;  %v2183_v50 = vld [vmem:[%s4855_s0] sm:$0xf]  ;;  %v2511_v53 = vld [vmem:[%s4854_s1 + $0xd0] sm:$0xf]  ;;  %v2584_v56 = vor.u32 %v3050_v46, %v2583_v41 }
   0xe   :  { %v3032_v54 = vld [vmem:[%s4854_s1 + $0xd4] sm:$0xf0]  ;;  %v2648_v57 = vor.u32 %v3066_v48, %v2647_v47  ;;  %v2575_v58 = vld [vmem:[%s4854_s1 + $0x150] sm:$0xf]  ;;  %v2711_v59 = vld [vmem:[%s4854_s1 + $0x260] sm:$0xf]  ;;  %v3347_v62 = vor.u32 %v2952_v51, %v2183_v50 }
   0xf   :  { %v3082_v60 = vld [vmem:[%s4854_s1 + $0x264] sm:$0xf0]  ;;  %v3048_v61 = vld [vmem:[%s4854_s1 + $0x154] sm:$0xf0]  ;;  %v2639_v63 = vld [vmem:[%s4854_s1 + $0x1d0] sm:$0xf]  ;;  %v2512_v1 = vor.u32 %v3032_v54, %v2511_v53 }
  0x10   :  { %3150 = vmatpush.bf16.msra.mxu1 %v2440_v11  ;;  %3151 = vmatpush.bf16.msra.mxu2 %v2440_v11  ;;  %v3064_v0 = vld [vmem:[%s4854_s1 + $0x1d4] sm:$0xf0]  ;;  %v2503_v2 = vld [vmem:[%s4854_s1 + $0xc0] sm:$0xf]  ;;  %v3030_v3 = vld [vmem:[%s4854_s1 + $0xc4] sm:$0xf0]  ;;  %v2712_v4 = vor.u32 %v3082_v60, %v2711_v59  ;;  %v2576_v5 = vor.u32 %v3048_v61, %v2575_v58 }
  0x11   :  { %3152 = vmatpush.bf16.msra.mxu3 %v2440_v11  ;;  %1059 = vmatpush.bf16.msra.mxu0 %v2440_v11  ;;  %v2640_v6 = vor.u32 %v3064_v0, %v2639_v63  ;;  %v2567_v7 = vld [vmem:[%s4854_s1 + $0x140] sm:$0xf]  ;;  %v2703_v8 = vld [vmem:[%s4854_s1 + $0x250] sm:$0xf]  ;;  %v3080_v9 = vld [vmem:[%s4854_s1 + $0x254] sm:$0xf0]  ;;  %v2504_v13 = vor.u32 %v3030_v3, %v2503_v2 }
  0x12   :  { %v3046_v10 = vld [vmem:[%s4854_s1 + $0x144] sm:$0xf0]  ;;  %v2631_v11 = vld [vmem:[%s4854_s1 + $0x1c0] sm:$0xf]  ;;  %v3028_v15 = vld [vmem:[%s4854_s1 + $0xb4] sm:$0xf0]  ;;  %v2704_v16 = vor.u32 %v3080_v9, %v2703_v8 }
  0x13   :  { %v3062_v12 = vld [vmem:[%s4854_s1 + $0x1c4] sm:$0xf0]  ;;  %v2559_v21 = vld [vmem:[%s4854_s1 + $0x130] sm:$0xf]  ;;  %v2695_v22 = vld [vmem:[%s4854_s1 + $0x240] sm:$0xf] }
  0x14   :  { %3153 = vmatpush.bf16.msra.mxu1 %v2432_v14  ;;  %3154 = vmatpush.bf16.msra.mxu2 %v2432_v14  ;;  %v2632_v18 = vor.u32 %v3062_v12, %v2631_v11  ;;  %v2267_v19 = vld [vmem:[%s4855_s0 + $0xa8] sm:$0xf]  ;;  %v3044_v24 = vld [vmem:[%s4854_s1 + $0x134] sm:$0xf0]  ;;  %v2623_v25 = vld [vmem:[%s4854_s1 + $0x1b0] sm:$0xf] }
  0x15   :  { %3155 = vmatpush.bf16.msra.mxu3 %v2432_v14  ;;  %1060 = vmatpush.bf16.msra.mxu0 %v2432_v14  ;;  %v2495_v14 = vld [vmem:[%s4854_s1 + $0xb0] sm:$0xf]  ;;  %v3078_v23 = vld [vmem:[%s4854_s1 + $0x244] sm:$0xf0]  ;;  %v3060_v26 = vld [vmem:[%s4854_s1 + $0x1b4] sm:$0xf0] }
  0x16   :  { %v2323_v27 = vld [vmem:[%s4855_s0 + $0x118] sm:$0xf]  ;;  %v2987_v28 = vld [vmem:[%s4855_s0 + $0x130] sm:$0xf0]  ;;  %v2379_v29 = vld [vmem:[%s4855_s0 + $0x188] sm:$0xf]  ;;  %v2496_v30 = vor.u32 %v3028_v15, %v2495_v14  ;;  %v2696_v34 = vor.u32 %v3078_v23, %v2695_v22  ;;  %v2624_v36 = vor.u32 %v3060_v26, %v2623_v25 }
  0x17   :  { %v2487_v32 = vld [vmem:[%s4854_s1 + $0xa0] sm:$0xf]  ;;  %v3026_v33 = vld [vmem:[%s4854_s1 + $0xa4] sm:$0xf0]  ;;  %v2687_v38 = vld [vmem:[%s4854_s1 + $0x230] sm:$0xf]  ;;  %v3440_v41 = vor.u32 %v2987_v28, %v2323_v27 }
  0x18   :  { %3156 = vmatpush.bf16.msra.mxu1 %v2424_v17  ;;  %3157 = vmatpush.bf16.msra.mxu2 %v2424_v17  ;;  %v2551_v37 = vld [vmem:[%s4854_s1 + $0x120] sm:$0xf]  ;;  %v3042_v42 = vld [vmem:[%s4854_s1 + $0x124] sm:$0xf0]  ;;  %v2211_v48 = vld [vmem:[%s4855_s0 + $0x38] sm:$0xf]  ;;  %v2488_v51 = vor.u32 %v3026_v33, %v2487_v32 }
  0x19   :  { %3158 = vmatpush.bf16.msra.mxu3 %v2424_v17  ;;  %1061 = vmatpush.bf16.msra.mxu0 %v2424_v17  ;;  %v2568_v17 = vor.u32 %v3046_v10, %v2567_v7  ;;  %v2615_v43 = vld [vmem:[%s4854_s1 + $0x1a0] sm:$0xf]  ;;  %v3058_v46 = vld [vmem:[%s4854_s1 + $0x1a4] sm:$0xf0]  ;;  %v2959_v50 = vld [vmem:[%s4855_s0 + $0x50] sm:$0xf0] }
  0x1a   :  { %v3024_v53 = vld [vmem:[%s4854_s1 + $0x94] sm:$0xf0]  ;;  %v2679_v58 = vld [vmem:[%s4854_s1 + $0x220] sm:$0xf]  ;;  %v3074_v59 = vld [vmem:[%s4854_s1 + $0x224] sm:$0xf0]  ;;  %v3479_v61 = vor.u32 %v2959_v50, %v2211_v48 }
  0x1b   :  { %v3040_v60 = vld [vmem:[%s4854_s1 + $0x114] sm:$0xf0]  ;;  %v2607_v63 = vld [vmem:[%s4854_s1 + $0x190] sm:$0xf]  ;;  %v2471_v2 = vld [vmem:[%s4854_s1 + $0x80] sm:$0xf] }
  0x1c   :  { %3159 = vmatpush.bf16.msra.mxu1 %v2416_v20  ;;  %3160 = vmatpush.bf16.msra.mxu2 %v2416_v20  ;;  %v3056_v0 = vld [vmem:[%s4854_s1 + $0x194] sm:$0xf0]  ;;  %v3022_v3 = vld [vmem:[%s4854_s1 + $0x84] sm:$0xf0]  ;;  %v2535_v7 = vld [vmem:[%s4854_s1 + $0x100] sm:$0xf] }
  0x1d   :  { %3161 = vmatpush.bf16.msra.mxu3 %v2416_v20  ;;  %1062 = vmatpush.bf16.msra.mxu0 %v2416_v20  ;;  %v2973_v20 = vld [vmem:[%s4855_s0 + $0xc0] sm:$0xf0]  ;;  %v2671_v8 = vld [vmem:[%s4854_s1 + $0x210] sm:$0xf]  ;;  %v3072_v9 = vld [vmem:[%s4854_s1 + $0x214] sm:$0xf0]  ;;  %v2472_v15 = vor.u32 %v3022_v3, %v2471_v2 }
  0x1e   :  { %v3038_v10 = vld [vmem:[%s4854_s1 + $0x104] sm:$0xf0]  ;;  %v2599_v11 = vld [vmem:[%s4854_s1 + $0x180] sm:$0xf]  ;;  %v3100_v14 = vld [vmem:[%s4854_s1 + $0x2f4] sm:$0xf0] }
  0x1f   :  { %v3054_v12 = vld [vmem:[%s4854_s1 + $0x184] sm:$0xf0]  ;;  %v2185_v22 = vld [vmem:[%s4855_s0 + $0x1c] sm:$0xf0]  ;;  %v2953_v25 = vld [vmem:[%s4855_s0 + $0x20] sm:$0xf0] }
  0x20   :  { %3162 = vmatpush.bf16.msra.mxu1 %v2408_v31  ;;  %3163 = vmatpush.bf16.msra.mxu2 %v2408_v31  ;;  %v2950_v26 = vld [vmem:[%s4855_s0 + $0xc] sm:$0xf]  ;;  %v2193_v27 = vld [vmem:[%s4855_s0 + $0x24] sm:$0xf0]  ;;  %v2219_v48 = vld [vmem:[%s4855_s0 + $0x40] sm:$0xf] }
  0x21   :  { %3164 = vmatpush.bf16.msra.mxu3 %v2408_v31  ;;  %1063 = vmatpush.bf16.msra.mxu0 %v2408_v31  ;;  %v3001_v31 = vld [vmem:[%s4855_s0 + $0x1a0] sm:$0xf0]  ;;  %v3553_v33 = vor.u32 %v2950_v26, %v2193_v27  ;;  %v2960_v50 = vld [vmem:[%s4855_s0 + $0x58] sm:$0xf0]  ;;  %v2247_v2 = vld [vmem:[%s4855_s0 + $0x78] sm:$0xf] }
  0x22   :  { %v3451_v47 = vor.u32 %v3001_v31, %v2379_v29  ;;  %v2775_v29 = vld [vmem:[%s4854_s1 + $0x2e0] sm:$0xf]  ;;  %v2967_v3 = vld [vmem:[%s4855_s0 + $0x90] sm:$0xf0] }
  0x23   :  { %1074 = vmatmul.bf16.vlgmr.msra.gmra.mxu1 %v3306_v44  ;;  %1084 = vmatmul.bf16.vlgmr.msra.gmra.mxu2 %v3308_v45  ;;  %v2743_v27 = vld [vmem:[%s4854_s1 + $0x2a0] sm:$0xf] }
  0x24   :  { %1105 = vmatpush.bf16.msrb.mxu1 %v2528_v35  ;;  %1154 = vmatpush.bf16.msrb.mxu2 %v2592_v39  ;;  %v2560_v35 = vor.u32 %v3044_v24, %v2559_v21  ;;  %v3076_v39 = vld [vmem:[%s4854_s1 + $0x234] sm:$0xf0]  ;;  %v2949_v21 = vld [vmem:[%s4855_s0 + $0x4] sm:$0xf]  ;;  %v2191_v24 = vld [vmem:[%s4855_s0 + $0x8] sm:$0xf] }
  0x25   :  { %1203 = vmatpush.bf16.msrb.mxu3 %v2656_v40  ;;  %1252 = vmatpush.bf16.msrb.mxu0 %v2720_v55  ;;  %v3438_v40 = vor.u32 %v2973_v20, %v2267_v19  ;;  %v2688_v54 = vor.u32 %v3076_v39, %v2687_v38  ;;  %v2552_v55 = vor.u32 %v3042_v42, %v2551_v37  ;;  %v2663_v19 = vld [vmem:[%s4854_s1 + $0x200] sm:$0xf]  ;;  %v3070_v20 = vld [vmem:[%s4854_s1 + $0x204] sm:$0xf0]  ;;  %v2767_v38 = vld [vmem:[%s4854_s1 + $0x2d0] sm:$0xf] }
  0x26   :  { %1094 = vmatmul.bf16.vlgmr.msra.gmra.mxu3 %v3319_v49  ;;  %1064 = vmatmul.bf16.vlgmr.msra.gmra.mxu0 %v3347_v62  ;;  %v2664_v28 = vor.u32 %v3070_v20, %v2663_v19  ;;  %v3549_v31 = vor.u32 %v2949_v21, %v2185_v22  ;;  %v3551_v32 = vor.u32 %v2953_v25, %v2191_v24  ;;  %v3096_v39 = vld [vmem:[%s4854_s1 + $0x2d4] sm:$0xf0]  ;;  %v2971_v19 = vld [vmem:[%s4855_s0 + $0xb4] sm:$0xf]  ;;  %v2277_v20 = vld [vmem:[%s4855_s0 + $0xcc] sm:$0xf0] }
  0x27   :  { %v2768_v42 = vor.u32 %v3096_v39, %v2767_v38  ;;  %v2283_v24 = vld [vmem:[%s4855_s0 + $0xb8] sm:$0xf]  ;;  %v2975_v25 = vld [vmem:[%s4855_s0 + $0xd0] sm:$0xf0]  ;;  %v2978_v38 = vld [vmem:[%s4855_s0 + $0xec] sm:$0xf] }
  0x28   :  { %1106 = vmatpush.bf16.msrb.mxu1 %v2520_v52  ;;  %1155 = vmatpush.bf16.msrb.mxu2 %v2584_v56  ;;  %v2479_v52 = vld [vmem:[%s4854_s1 + $0x90] sm:$0xf]  ;;  %v2616_v56 = vor.u32 %v3058_v46, %v2615_v43  ;;  %v2956_v43 = vld [vmem:[%s4855_s0 + $0x3c] sm:$0xf]  ;;  %v2213_v46 = vld [vmem:[%s4855_s0 + $0x54] sm:$0xf0]  ;;  %v3689_v26 = vor.u32 %v2975_v25, %v2283_v24 }
  0x29   :  { %1204 = vmatpush.bf16.msrb.mxu3 %v2648_v57  ;;  %1253 = vmatpush.bf16.msrb.mxu0 %v2712_v4  ;;  %v2543_v57 = vld [vmem:[%s4854_s1 + $0x110] sm:$0xf]  ;;  %v2680_v4 = vor.u32 %v3074_v59, %v2679_v58  ;;  %v2759_v59 = vld [vmem:[%s4854_s1 + $0x2c0] sm:$0xf]  ;;  %v2305_v39 = vld [vmem:[%s4855_s0 + $0x104] sm:$0xf0] }
  0x2a   :  { %v3035_v24 = vld [vmem:[%s4854_s1 + $0xf4] sm:$0xf]  ;;  %v2988_v25 = vld [vmem:[%s4855_s0 + $0x138] sm:$0xf0] }
  0x2c   :  { %1107 = vmatpush.bf16.msrb.mxu1 %v2512_v1  ;;  %1156 = vmatpush.bf16.msrb.mxu2 %v2576_v5  ;;  %v2480_v1 = vor.u32 %v3024_v53, %v2479_v52  ;;  %v2544_v5 = vor.u32 %v3040_v60, %v2543_v57  ;;  %v2221_v52 = vld [vmem:[%s4855_s0 + $0x5c] sm:$0xf0]  ;;  %v3591_v53 = vor.u32 %v2956_v43, %v2213_v46  ;;  %v2961_v57 = vld [vmem:[%s4855_s0 + $0x60] sm:$0xf0]  ;;  %v3094_v60 = vld [vmem:[%s4854_s1 + $0x2c4] sm:$0xf0] }
  0x2d   :  { %1205 = vmatpush.bf16.msrb.mxu3 %v2640_v6  ;;  %1254 = vmatpush.bf16.msrb.mxu0 %v2704_v16  ;;  %v2608_v6 = vor.u32 %v3056_v0, %v2607_v63  ;;  %v2672_v16 = vor.u32 %v3072_v9, %v2671_v8  ;;  %v2760_v63 = vor.u32 %v3094_v60, %v2759_v59  ;;  %v2963_v0 = vld [vmem:[%s4855_s0 + $0x74] sm:$0xf]  ;;  %v2255_v9 = vld [vmem:[%s4855_s0 + $0x80] sm:$0xf]  ;;  %v2735_v59 = vld [vmem:[%s4854_s1 + $0x290] sm:$0xf] }
  0x2e   :  { %v3721_v46 = vor.u32 %v2978_v38, %v2305_v39  ;;  %v3088_v60 = vld [vmem:[%s4854_s1 + $0x294] sm:$0xf0] }
  0x30   :  { %1108 = vmatpush.bf16.msrb.mxu1 %v2504_v13  ;;  %1157 = vmatpush.bf16.msrb.mxu2 %v2568_v17  ;;  %v2783_v13 = vld [vmem:[%s4854_s1 + $0x2f0] sm:$0xf]  ;;  %v2536_v17 = vor.u32 %v3038_v10, %v2535_v7  ;;  %v3635_v7 = vor.u32 %v2967_v3, %v2247_v2  ;;  %v2968_v10 = vld [vmem:[%s4855_s0 + $0x98] sm:$0xf0]  ;;  %v2839_v3 = vld [vmem:[%s4854_s1 + $0x360] sm:$0xf] }
  0x31   :  { %1206 = vmatpush.bf16.msrb.mxu3 %v2632_v18  ;;  %1255 = vmatpush.bf16.msrb.mxu0 %v2696_v34  ;;  %v2600_v18 = vor.u32 %v3054_v12, %v2599_v11  ;;  %v2784_v23 = vor.u32 %v3100_v14, %v2783_v13  ;;  %v2199_v34 = vld [vmem:[%s4855_s0 + $0x10] sm:$0xf]  ;;  %v3647_v11 = vor.u32 %v2968_v10, %v2255_v9  ;;  %v3092_v13 = vld [vmem:[%s4854_s1 + $0x2b4] sm:$0xf0]  ;;  %v3017_v9 = vld [vmem:[%s4854_s1 + $0x64] sm:$0xf] }
  0x32   :  { %v2751_v12 = vld [vmem:[%s4854_s1 + $0x2b0] sm:$0xf]  ;;  %v2457_v10 = vld [vmem:[%s4854_s1 + $0x68] sm:$0xf0] }
  0x33   :  { %1079 = vmatmul.bf16.gmra.mxu1 %v3438_v40  ;;  %1089 = vmatmul.bf16.gmra.mxu2 %v3440_v41  ;;  %v2752_v14 = vor.u32 %v3092_v13, %v2751_v12  ;;  %v2460_v12 = vor.u32 %v3017_v9, %v2457_v10  ;;  %v2831_v13 = vld [vmem:[%s4854_s1 + $0x350] sm:$0xf]  ;;  %v3086_v9 = vld [vmem:[%s4854_s1 + $0x284] sm:$0xf0] }
  0x34   :  { %1109 = vmatpush.bf16.msrb.mxu1 %v2496_v30  ;;  %1158 = vmatpush.bf16.msrb.mxu2 %v2560_v35  ;;  %v3098_v30 = vld [vmem:[%s4854_s1 + $0x2e4] sm:$0xf0]  ;;  %v2954_v35 = vld [vmem:[%s4855_s0 + $0x28] sm:$0xf0] }
  0x35   :  { %1207 = vmatpush.bf16.msrb.mxu3 %v2624_v36  ;;  %1256 = vmatpush.bf16.msrb.mxu0 %v2688_v54  ;;  %v2776_v36 = vor.u32 %v3098_v30, %v2775_v29  ;;  %v3563_v37 = vor.u32 %v2954_v35, %v2199_v34  ;;  %v3593_v54 = vor.u32 %v2960_v50, %v2219_v48  ;;  %v2977_v30 = vld [vmem:[%s4855_s0 + $0xe4] sm:$0xf]  ;;  %v2297_v34 = vld [vmem:[%s4855_s0 + $0xfc] sm:$0xf0]  ;;  %v2303_v35 = vld [vmem:[%s4855_s0 + $0xe8] sm:$0xf] }
  0x36   :  { %1099 = vmatmul.bf16.gmra.mxu3 %v3451_v47  ;;  %1069 = vmatmul.bf16.gmra.mxu0 %v3479_v61  ;;  %v2311_v48 = vld [vmem:[%s4855_s0 + $0xf0] sm:$0xf]  ;;  %v2982_v50 = vld [vmem:[%s4855_s0 + $0x108] sm:$0xf0] }
  0x38   :  { %1110 = vmatpush.bf16.msrb.mxu1 %v2488_v51  ;;  %1159 = vmatpush.bf16.msrb.mxu2 %v2552_v55  ;;  %v2957_v51 = vld [vmem:[%s4855_s0 + $0x44] sm:$0xf] }
  0x39   :  { %1208 = vmatpush.bf16.msrb.mxu3 %v2616_v56  ;;  %1257 = vmatpush.bf16.msrb.mxu0 %v2680_v4  ;;  %v3595_v55 = vor.u32 %v2957_v51, %v2221_v52  ;;  %v2227_v56 = vld [vmem:[%s4855_s0 + $0x48] sm:$0xf]  ;;  %v2964_v4 = vld [vmem:[%s4855_s0 + $0x7c] sm:$0xf]  ;;  %v2847_v51 = vld [vmem:[%s4854_s1 + $0x370] sm:$0xf] }
  0x3a   :  { %v3605_v58 = vor.u32 %v2961_v57, %v2227_v56  ;;  %v3116_v52 = vld [vmem:[%s4854_s1 + $0x374] sm:$0xf0]  ;;  %v3737_v57 = vor.u32 %v2982_v50, %v2311_v48  ;;  %v3013_v50 = vld [vmem:[%s4854_s1 + $0x44] sm:$0xf] }
  0x3b   :  { %v2848_v56 = vor.u32 %v3116_v52, %v2847_v51  ;;  %v2441_v51 = vld [vmem:[%s4854_s1 + $0x48] sm:$0xf0]  ;;  %v3033_v52 = vld [vmem:[%s4854_s1 + $0xe4] sm:$0xf] }
  0x3c   :  { %1111 = vmatpush.bf16.msrb.mxu1 %v2480_v1  ;;  %1160 = vmatpush.bf16.msrb.mxu2 %v2544_v5  ;;  %v2241_v1 = vld [vmem:[%s4855_s0 + $0x8c] sm:$0xf0]  ;;  %v2249_v5 = vld [vmem:[%s4855_s0 + $0x94] sm:$0xf0] }
  0x3d   :  { %1209 = vmatpush.bf16.msrb.mxu3 %v2608_v6  ;;  %1258 = vmatpush.bf16.msrb.mxu0 %v2672_v16  ;;  %v3633_v6 = vor.u32 %v2963_v0, %v2241_v1  ;;  %v3637_v8 = vor.u32 %v2964_v4, %v2249_v5  ;;  %v2269_v16 = vld [vmem:[%s4855_s0 + $0xc4] sm:$0xf0]  ;;  %v2736_v0 = vor.u32 %v3088_v60, %v2735_v59  ;;  %v2465_v1 = vld [vmem:[%s4854_s1 + $0x78] sm:$0xf0]  ;;  %v2989_v60 = vld [vmem:[%s4855_s0 + $0x140] sm:$0xf0] }
  0x3e   :  { %v3114_v4 = vld [vmem:[%s4854_s1 + $0x364] sm:$0xf0] }
  0x3f   :  { %v2840_v5 = vor.u32 %v3114_v4, %v2839_v3  ;;  %v2339_v59 = vld [vmem:[%s4855_s0 + $0x128] sm:$0xf]  ;;  %v3108_v3 = vld [vmem:[%s4854_s1 + $0x334] sm:$0xf0] }
  0x40   :  { %1112 = vmatpush.bf16.msrb.mxu1 %v2472_v15  ;;  %1161 = vmatpush.bf16.msrb.mxu2 %v2536_v17  ;;  %v2970_v15 = vld [vmem:[%s4855_s0 + $0xac] sm:$0xf]  ;;  %v2275_v17 = vld [vmem:[%s4855_s0 + $0xb0] sm:$0xf]  ;;  %v3839_v4 = vor.u32 %v2989_v60, %v2339_v59  ;;  %v3007_v59 = vld [vmem:[%s4854_s1 + $0x14] sm:$0xf] }
  0x41   :  { %1210 = vmatpush.bf16.msrb.mxu3 %v2600_v18  ;;  %1259 = vmatpush.bf16.msrb.mxu0 %v2664_v28  ;;  %v2974_v18 = vld [vmem:[%s4855_s0 + $0xc8] sm:$0xf0]  ;;  %v3675_v21 = vor.u32 %v2970_v15, %v2269_v16  ;;  %v3090_v28 = vld [vmem:[%s4854_s1 + $0x2a4] sm:$0xf0]  ;;  %v2984_v15 = vld [vmem:[%s4855_s0 + $0x11c] sm:$0xf] }
  0x42   :  { %v3677_v22 = vor.u32 %v2974_v18, %v2275_v17  ;;  %v2744_v29 = vor.u32 %v3090_v28, %v2743_v27  ;;  %v2325_v16 = vld [vmem:[%s4855_s0 + $0x134] sm:$0xf0]  ;;  %v2331_v17 = vld [vmem:[%s4855_s0 + $0x120] sm:$0xf]  ;;  %v2985_v27 = vld [vmem:[%s4855_s0 + $0x124] sm:$0xf] }
  0x43   :  { %1113 = vmatmul.bf16.vlgmr.msrb.gmra.mxu1 %v3549_v31  ;;  %1162 = vmatmul.bf16.vlgmr.msrb.gmra.mxu2 %v3551_v32  ;;  %v3807_v39 = vor.u32 %v2984_v15, %v2325_v16  ;;  %v3809_v48 = vor.u32 %v2988_v25, %v2331_v17  ;;  %4877 = vst [vmem:[#allocation3_spill] sm:$0xff] %v3839_v4  ;;  %v3031_v15 = vld [vmem:[%s4854_s1 + $0xd4] sm:$0xf]  ;;  %v2513_v16 = vld [vmem:[%s4854_s1 + $0xd8] sm:$0xf0] }
  0x44   :  { %1301 = vmatpush.bf16.msra.mxu1 %v2784_v23  ;;  %v3679_v23 = vor.u32 %v2971_v19, %v2277_v20  ;;  %1350 = vmatpush.bf16.msra.mxu2 %v2848_v56  ;;  %v3015_v19 = vld [vmem:[%s4854_s1 + $0x54] sm:$0xf]  ;;  %v2449_v20 = vld [vmem:[%s4854_s1 + $0x58] sm:$0xf0]  ;;  %v3009_v25 = vld [vmem:[%s4854_s1 + $0x24] sm:$0xf] }
  0x45   :  { %v2452_v28 = vor.u32 %v3015_v19, %v2449_v20  ;;  %v2807_v19 = vld [vmem:[%s4854_s1 + $0x320] sm:$0xf]  ;;  %v3106_v20 = vld [vmem:[%s4854_s1 + $0x324] sm:$0xf0]  ;;  %v2417_v60 = vld [vmem:[%s4854_s1 + $0x18] sm:$0xf0] }
  0x46   :  { %1211 = vmatmul.bf16.vlgmr.msrb.gmra.mxu3 %v3553_v33  ;;  %1260 = vmatmul.bf16.vlgmr.msrb.gmra.mxu0 %v3563_v37 }
  0x48   :  { %1302 = vmatpush.bf16.msra.mxu1 %v2776_v36  ;;  %v2981_v36 = vld [vmem:[%s4855_s0 + $0x100] sm:$0xf0]  ;;  %1351 = vmatpush.bf16.msra.mxu2 %v2840_v5  ;;  %v2727_v5 = vld [vmem:[%s4854_s1 + $0x280] sm:$0xf] }
  0x49   :  { %v3719_v43 = vor.u32 %v2981_v36, %v2303_v35  ;;  %v2823_v35 = vld [vmem:[%s4854_s1 + $0x340] sm:$0xf]  ;;  %v3110_v36 = vld [vmem:[%s4854_s1 + $0x344] sm:$0xf0] }
  0x4a   :  { %v2824_v38 = vor.u32 %v3110_v36, %v2823_v35  ;;  %v2799_v35 = vld [vmem:[%s4854_s1 + $0x310] sm:$0xf]  ;;  %v3104_v36 = vld [vmem:[%s4854_s1 + $0x314] sm:$0xf0] }
  0x4c   :  { %1303 = vmatpush.bf16.msra.mxu1 %v2768_v42  ;;  %v3717_v42 = vor.u32 %v2977_v30, %v2297_v34  ;;  %v2333_v30 = vld [vmem:[%s4855_s0 + $0x13c] sm:$0xf0] }
  0x4d   :  { %v3820_v56 = vor.u32 %v2985_v27, %v2333_v30  ;;  %v2425_v27 = vld [vmem:[%s4854_s1 + $0x28] sm:$0xf0] }
  0x4e   :  { %v2428_v30 = vor.u32 %v3009_v25, %v2425_v27  ;;  %v2996_v25 = vld [vmem:[%s4855_s0 + $0x178] sm:$0xf0]  ;;  %v2489_v27 = vld [vmem:[%s4854_s1 + $0xa8] sm:$0xf0] }
  0x4f   :  { %4876 = vst [vmem:[#allocation2_spill] sm:$0xff] %v3820_v56 }
  0x50   :  { %1304 = vmatpush.bf16.msra.mxu1 %v2760_v63  ;;  %v3019_v63 = vld [vmem:[%s4854_s1 + $0x74] sm:$0xf] }
  0x51   :  { %v2468_v2 = vor.u32 %v3019_v63, %v2465_v1  ;;  %v2521_v63 = vld [vmem:[%s4854_s1 + $0xe8] sm:$0xf0] }
  0x52   :  { %v2524_v1 = vor.u32 %v3033_v52, %v2521_v63  ;;  %v2800_v52 = vor.u32 %v3104_v36, %v2799_v35  ;;  %v3027_v63 = vld [vmem:[%s4854_s1 + $0xb4] sm:$0xf]  ;;  %v2593_v36 = vld [vmem:[%s4854_s1 + $0x178] sm:$0xf0] }
  0x53   :  { %1118 = vmatmul.bf16.gmra.mxu1 %v3591_v53  ;;  %1167 = vmatmul.bf16.gmra.mxu2 %v3593_v54  ;;  %v3051_v35 = vld [vmem:[%s4854_s1 + $0x174] sm:$0xf] }
  0x54   :  { %1305 = vmatpush.bf16.msra.mxu1 %v2752_v14  ;;  %1399 = vmatpush.bf16.msra.mxu3 %v2468_v2  ;;  %v3112_v14 = vld [vmem:[%s4854_s1 + $0x354] sm:$0xf0]  ;;  %v2815_v2 = vld [vmem:[%s4854_s1 + $0x330] sm:$0xf] }
  0x55   :  { %v2832_v18 = vor.u32 %v3112_v14, %v2831_v13  ;;  %v2816_v10 = vor.u32 %v3108_v3, %v2815_v2  ;;  %v2728_v13 = vor.u32 %v3086_v9, %v2727_v5  ;;  %v2433_v14 = vld [vmem:[%s4854_s1 + $0x38] sm:$0xf0]  ;;  %v2361_v3 = vld [vmem:[%s4855_s0 + $0x174] sm:$0xf0]  ;;  %v2420_v5 = vor.u32 %v3007_v59, %v2417_v60 }
  0x56   :  { %1216 = vmatmul.bf16.gmra.mxu3 %v3595_v55  ;;  %1265 = vmatmul.bf16.gmra.mxu0 %v3605_v58  ;;  %v2497_v2 = vld [vmem:[%s4854_s1 + $0xb8] sm:$0xf0] }
  0x57   :  { %1352 = vmatpush.bf16.msra.mxu2 %v2832_v18  ;;  %v2516_v18 = vor.u32 %v3031_v15, %v2513_v16  ;;  %v2500_v9 = vor.u32 %v3027_v63, %v2497_v2  ;;  %v3005_v16 = vld [vmem:[%s4854_s1 + $0x4] sm:$0xf] }
  0x58   :  { %1306 = vmatpush.bf16.msra.mxu1 %v2744_v29  ;;  %1400 = vmatpush.bf16.msra.mxu3 %v2460_v12  ;;  %v2529_v29 = vld [vmem:[%s4854_s1 + $0xf8] sm:$0xf0]  ;;  %v3011_v12 = vld [vmem:[%s4854_s1 + $0x34] sm:$0xf]  ;;  %v3021_v2 = vld [vmem:[%s4854_s1 + $0x84] sm:$0xf] }
  0x59   :  { %v2532_v34 = vor.u32 %v3035_v24, %v2529_v29  ;;  %v2436_v17 = vor.u32 %v3011_v12, %v2433_v14  ;;  %v2808_v24 = vor.u32 %v3106_v20, %v2807_v19  ;;  %v2505_v29 = vld [vmem:[%s4854_s1 + $0xc8] sm:$0xf0]  ;;  %v3102_v12 = vld [vmem:[%s4854_s1 + $0x304] sm:$0xf0] }
  0x5b   :  { %1448 = vmatpush.bf16.msra.mxu0 %v2532_v34  ;;  %1353 = vmatpush.bf16.msra.mxu2 %v2824_v38  ;;  %v2991_v38 = vld [vmem:[%s4855_s0 + $0x154] sm:$0xf] }
  0x5c   :  { %1307 = vmatpush.bf16.msra.mxu1 %v2736_v0  ;;  %1401 = vmatpush.bf16.msra.mxu3 %v2452_v28  ;;  %v2444_v0 = vor.u32 %v3013_v50, %v2441_v51  ;;  %v3029_v28 = vld [vmem:[%s4854_s1 + $0xc4] sm:$0xf]  ;;  %v2353_v50 = vld [vmem:[%s4855_s0 + $0x16c] sm:$0xf0]  ;;  %v2359_v51 = vld [vmem:[%s4855_s0 + $0x158] sm:$0xf] }
  0x5d   :  { %v2508_v34 = vor.u32 %v3029_v28, %v2505_v29  ;;  %v3921_v14 = vor.u32 %v2991_v38, %v2353_v50  ;;  %v3023_v38 = vld [vmem:[%s4854_s1 + $0x94] sm:$0xf] }
  0x5f   :  { %1449 = vmatpush.bf16.msra.mxu0 %v2524_v1  ;;  %1354 = vmatpush.bf16.msra.mxu2 %v2816_v10  ;;  %v2992_v1 = vld [vmem:[%s4855_s0 + $0x15c] sm:$0xf]  ;;  %v2791_v10 = vld [vmem:[%s4854_s1 + $0x300] sm:$0xf] }
  0x60   :  { %1402 = vmatpush.bf16.msra.mxu3 %v2444_v0  ;;  %1308 = vmatpush.bf16.msra.mxu1 %v2728_v13  ;;  %v2995_v0 = vld [vmem:[%s4855_s0 + $0x170] sm:$0xf0]  ;;  %v2792_v13 = vor.u32 %v3102_v12, %v2791_v10  ;;  %v3936_v20 = vor.u32 %v2992_v1, %v2361_v3  ;;  %v2473_v3 = vld [vmem:[%s4854_s1 + $0x88] sm:$0xf0] }
  0x61   :  { %v3923_v15 = vor.u32 %v2995_v0, %v2359_v51  ;;  %v2596_v51 = vor.u32 %v3051_v35, %v2593_v36  ;;  %v2476_v10 = vor.u32 %v3021_v2, %v2473_v3  ;;  %v2998_v12 = vld [vmem:[%s4855_s0 + $0x18c] sm:$0xf]  ;;  %v3049_v2 = vld [vmem:[%s4854_s1 + $0x164] sm:$0xf] }
  0x62   :  { %4879 = vst [vmem:[#allocation5_spill] sm:$0xff] %v3936_v20  ;;  %v2585_v3 = vld [vmem:[%s4854_s1 + $0x168] sm:$0xf0] }
  0x63   :  { %1123 = vmatmul.bf16.gmra.mxu1 %v3633_v6  ;;  %1172 = vmatmul.bf16.gmra.mxu2 %v3635_v7  ;;  %4878 = vst [vmem:[#allocation4_spill] sm:$0xff] %v3923_v15 }
  0x64   :  { %1450 = vmatpush.bf16.msra.mxu0 %v2516_v18  ;;  %1403 = vmatpush.bf16.msra.mxu3 %v2436_v17  ;;  %v2409_v17 = vld [vmem:[%s4854_s1 + $0x8] sm:$0xf0]  ;;  %v3025_v18 = vld [vmem:[%s4854_s1 + $0xa4] sm:$0xf] }
  0x65   :  { %1355 = vmatpush.bf16.msra.mxu2 %v2808_v24  ;;  %v2367_v24 = vld [vmem:[%s4855_s0 + $0x160] sm:$0xf]  ;;  %v2412_v28 = vor.u32 %v3005_v16, %v2409_v17  ;;  %v2492_v29 = vor.u32 %v3025_v18, %v2489_v27  ;;  %1497 = vmatpush.bf16.msrb.mxu1 %v2596_v51  ;;  %v2381_v16 = vld [vmem:[%s4855_s0 + $0x1a4] sm:$0xf0]  ;;  %v2387_v17 = vld [vmem:[%s4855_s0 + $0x190] sm:$0xf] }
  0x66   :  { %1221 = vmatmul.bf16.gmra.mxu3 %v3637_v8  ;;  %1270 = vmatmul.bf16.gmra.mxu0 %v3647_v11  ;;  %v3002_v18 = vld [vmem:[%s4855_s0 + $0x1a8] sm:$0xf0]  ;;  %v4008_v35 = vor.u32 %v2998_v12, %v2381_v16  ;;  %v2588_v12 = vor.u32 %v3049_v2, %v2585_v3  ;;  %v2955_v2 = vld [vmem:[%s4855_s0 + $0x30] sm:$0xf0] }
  0x67   :  { %v4010_v36 = vor.u32 %v3002_v18, %v2387_v17 }
  0x68   :  { %1451 = vmatpush.bf16.msra.mxu0 %v2508_v34  ;;  %1404 = vmatpush.bf16.msra.mxu3 %v2428_v30  ;;  %v3950_v30 = vld [vmem:[%s4856_s2] sm:$0x3]  ;;  %v3954_v34 = vor.u32 %v2996_v25, %v2367_v24  ;;  %v2999_v24 = vld [vmem:[%s4855_s0 + $0x194] sm:$0xf]  ;;  %v2389_v25 = vld [vmem:[%s4855_s0 + $0x1ac] sm:$0xf0] }
  0x69   :  { %1356 = vmatpush.bf16.msra.mxu2 %v2800_v52  ;;  %v2481_v52 = vld [vmem:[%s4854_s1 + $0x98] sm:$0xf0]  ;;  %v3970_v59 = vperm.slane %v3950_v30, 0  ;;  %4881 = vst [vmem:[#allocation7_spill] sm:$0xff] %v4010_v36  ;;  %1498 = vmatpush.bf16.msrb.mxu1 %v2588_v12 }
  0x6a   :  { %4880 = vst [vmem:[#allocation6_spill] sm:$0xff] %v3954_v34  ;;  %v2484_v60 = vor.u32 %v3023_v38, %v2481_v52  ;;  %v4017_v52 = vor.u32 %v2999_v24, %v2389_v25 }
  0x6c   :  { %1452 = vmatpush.bf16.msra.mxu0 %v2500_v9  ;;  %1405 = vmatpush.bf16.msra.mxu3 %v2420_v5  ;;  %4882 = vst [vmem:[#allocation8_spill] sm:$0xff] %v4017_v52 }
  0x6d   :  { %1357 = vmatpush.bf16.msra.mxu2 %v2792_v13 }
  0x70   :  { %1453 = vmatpush.bf16.msra.mxu0 %v2492_v29  ;;  %1406 = vmatpush.bf16.msra.mxu3 %v2412_v28 }
  0x73   :  { %1128 = vmatmul.bf16.gmra.mxu1 %v3675_v21  ;;  %1177 = vmatmul.bf16.gmra.mxu2 %v3677_v22 }
  0x74   :  { %1454 = vmatpush.bf16.msra.mxu0 %v2484_v60  ;;  %v2395_v60 = vld [vmem:[%s4855_s0 + $0x198] sm:$0xf] }
  0x76   :  { %1226 = vmatmul.bf16.gmra.mxu3 %v3679_v23  ;;  %1275 = vmatmul.bf16.gmra.mxu0 %v3689_v26 }
  0x78   :  { %1455 = vmatpush.bf16.msra.mxu0 %v2476_v10 }
  0x83   :  { %1133 = vmatmul.bf16.gmra.mxu1 %v3717_v42  ;;  %1182 = vmatmul.bf16.gmra.mxu2 %v3719_v43 }
  0x86   :  { %1231 = vmatmul.bf16.gmra.mxu3 %v3721_v46  ;;  %1280 = vmatmul.bf16.gmra.mxu0 %v3737_v57 }
  0x93   :  { %1138 = vmatmul.bf16.gmra.mxu1 %v3807_v39  ;;  %1187 = vmatmul.bf16.gmra.mxu2 %v3809_v48 }
  0x96   :  { %1236 = vmatmul.bf16.gmra.mxu3 %v3820_v56  ;;  %1285 = vmatmul.bf16.gmra.mxu0 %v3839_v4  ;;  %v2958_v56 = vld [vmem:[%s4855_s0 + $0x4c] sm:$0xf] }
  0xa0   :  { %v3934_v19 = vpop.f32.mrf.mxu1 }
  0xa3   :  { %1143 = vmatmul.bf16.gmra.mxu1 %v3921_v14  ;;  %1192 = vmatmul.bf16.gmra.mxu2 %v3923_v15  ;;  %v1065_v50 = vpop.f32.mrf.mxu0 }
  0xa4   :  { %v1066_v3 = vadd.f32 %v1065_v50, %v3970_v59  ;;  %v3047_v50 = vld [vmem:[%s4854_s1 + $0x154] sm:$0xf] }
  0xa6   :  { %1241 = vmatmul.bf16.gmra.mxu3 %v3936_v20  ;;  %v1085_v63 = vpop.f32.mrf.mxu2  ;;  %1290 = vmatmul.bf16.gmra.mxu0 %v3954_v34 }
  0xa7   :  { %v3973_v0 = vadd.f32 %v1085_v63, %v3970_v59  ;;  %v3003_v63 = vld [vmem:[%s4855_s0 + $0x1b0] sm:$0xf0] }
  0xa8   :  { %v3982_v5 = vpop.f32.mrf.mxu1 }
  0xa9   :  { %v1095_v1 = vpop.f32.mrf.mxu3 }
  0xaa   :  { %v3985_v9 = vadd.f32 %v1095_v1, %v3970_v59  ;;  %v4027_v1 = vor.u32 %v3003_v63, %v2395_v60  ;;  %v2201_v60 = vld [vmem:[%s4855_s0 + $0x2c] sm:$0xf0]  ;;  %v2207_v63 = vld [vmem:[%s4855_s0 + $0x18] sm:$0xf] }
  0xab   :  { %v1067_v13 = vpop.f32.mrf.mxu0 }
  0xac   :  { %4883 = vst [vmem:[#allocation9_spill] sm:$0xff] %v4027_v1 }
  0xae   :  { %v1087_v27 = vpop.f32.mrf.mxu2 }
  0xaf   :  { %v4006_v28 = vadd.f32 %v1087_v27, %v3970_v59  ;;  %v2951_v27 = vld [vmem:[%s4855_s0 + $0x14] sm:$0xf] }
  0xb0   :  { %v4012_v38 = vpop.f32.mrf.mxu1 }
  0xb1   :  { %v1097_v29 = vpop.f32.mrf.mxu3 }
  0xb2   :  { %v4015_v51 = vadd.f32 %v1097_v29, %v3970_v59 }
  0xb3   :  { %1148 = vmatmul.bf16.gmra.mxu1 %v4008_v35  ;;  %1197 = vmatmul.bf16.gmra.mxu2 %v4010_v36  ;;  %v1070_v10 = vpop.f32.mrf.mxu0 }
  0xb6   :  { %1246 = vmatmul.bf16.gmra.mxu3 %v4017_v52  ;;  %v1090_v16 = vpop.f32.mrf.mxu2  ;;  %1295 = vmatmul.bf16.gmra.mxu0 %v4027_v1  ;;  %v4061_v1 = vor.u32 %v2951_v27, %v2201_v60  ;;  %v4063_v52 = vor.u32 %v2955_v2, %v2207_v63  ;;  %v2577_v27 = vld [vmem:[%s4854_s1 + $0x158] sm:$0xf0]  ;;  %v1068_v2 = vadd.f32 %v1067_v13, %v3970_v59  ;;  %v2229_v13 = vld [vmem:[%s4855_s0 + $0x64] sm:$0xf0] }
  0xb7   :  { %v4037_v17 = vadd.f32 %v1090_v16, %v3970_v59  ;;  %v2580_v63 = vor.u32 %v3047_v50, %v2577_v27 }
  0xb8   :  { %v4040_v24 = vpop.f32.mrf.mxu1  ;;  %4884 = vst [vmem:[#allocation10_spill] sm:$0xff] %v4063_v52 }
  0xb9   :  { %v1100_v18 = vpop.f32.mrf.mxu3  ;;  %1499 = vmatpush.bf16.msrb.mxu1 %v2580_v63  ;;  %v4094_v63 = vor.u32 %v2958_v56, %v2229_v13  ;;  %v2569_v56 = vld [vmem:[%s4854_s1 + $0x148] sm:$0xf0] }
  0xba   :  { %v4043_v25 = vadd.f32 %v1100_v18, %v3970_v59 }
  0xbb   :  { %v1072_v29 = vpop.f32.mrf.mxu0 }
  0xbe   :  { %v1092_v12 = vpop.f32.mrf.mxu2 }
  0xbf   :  { %v4059_v16 = vadd.f32 %v1092_v12, %v3970_v59 }
  0xc0   :  { %v1114_v34 = vpop.f32.mrf.mxu1 }
  0xc1   :  { %v1102_v18 = vpop.f32.mrf.mxu3  ;;  %v1115_v20 = vadd.f32 %v1114_v34, %v1066_v3 }
  0xc2   :  { %v4066_v36 = vadd.f32 %v1102_v18, %v3970_v59 }
  0xc3   :  { %1309 = vmatmul.bf16.vlgmr.msra.gmra.mxu1 %v4061_v1  ;;  %1358 = vmatmul.bf16.vlgmr.msra.gmra.mxu2 %v4063_v52  ;;  %v1261_v60 = vpop.f32.mrf.mxu0 }
  0xc6   :  { %1407 = vmatmul.bf16.vlgmr.msra.gmra.mxu3 %v3347_v62  ;;  %v1163_v12 = vpop.f32.mrf.mxu2  ;;  %1456 = vmatmul.bf16.vlgmr.msra.gmra.mxu0 %v3549_v31  ;;  %v2962_v31 = vld [vmem:[%s4855_s0 + $0x68] sm:$0xf0] }
  0xc7   :  { %v1164_v34 = vadd.f32 %v1163_v12, %v1115_v20  ;;  %v2235_v20 = vld [vmem:[%s4855_s0 + $0x50] sm:$0xf] }
  0xc8   :  { %v1116_v18 = vpop.f32.mrf.mxu1 }
  0xc9   :  { %v1212_v3 = vpop.f32.mrf.mxu3  ;;  %v1117_v52 = vadd.f32 %v1116_v18, %v1068_v2  ;;  %v4096_v2 = vor.u32 %v2962_v31, %v2235_v20  ;;  %v1073_v20 = vadd.f32 %v1072_v29, %v3970_v59  ;;  %v2257_v29 = vld [vmem:[%s4855_s0 + $0x9c] sm:$0xf0] }
  0xca   :  { %v1213_v15 = vadd.f32 %v1212_v3, %v1164_v34 }
  0xcb   :  { %v1263_v62 = vpop.f32.mrf.mxu0  ;;  %4885 = vst [vmem:[#allocation11_spill] sm:$0xff] %v4096_v2 }
  0xcc   :  { %v4079_v4 = vadd.f32 %v1261_v60, %v1213_v15  ;;  %v1071_v15 = vadd.f32 %v1070_v10, %v3970_v59  ;;  %v3045_v10 = vld [vmem:[%s4854_s1 + $0x144] sm:$0xf] }
  0xcd   :  { %v2572_v13 = vor.u32 %v3045_v10, %v2569_v56  ;;  %v1076_v56 = vadd.f32 %v3934_v19, %v3970_v59  ;;  %v2561_v19 = vld [vmem:[%s4854_s1 + $0x138] sm:$0xf0] }
  0xce   :  { %v1165_v50 = vpop.f32.mrf.mxu2 }
  0xcf   :  { %v1166_v27 = vadd.f32 %v1165_v50, %v1117_v52  ;;  %1500 = vmatpush.bf16.msrb.mxu1 %v2572_v13 }
  0xd0   :  { %v1119_v12 = vpop.f32.mrf.mxu1 }
  0xd1   :  { %v1214_v60 = vpop.f32.mrf.mxu3  ;;  %v1120_v34 = vadd.f32 %v1119_v12, %v1071_v15 }
  0xd2   :  { %v1215_v3 = vadd.f32 %v1214_v60, %v1166_v27 }
  0xd3   :  { %1314 = vmatmul.bf16.gmra.mxu1 %v4094_v63  ;;  %1363 = vmatmul.bf16.gmra.mxu2 %v4096_v2  ;;  %v1266_v52 = vpop.f32.mrf.mxu0  ;;  %v3043_v2 = vld [vmem:[%s4854_s1 + $0x134] sm:$0xf] }
  0xd4   :  { %v4098_v18 = vadd.f32 %v1263_v62, %v1215_v3  ;;  %v2965_v3 = vld [vmem:[%s4855_s0 + $0x84] sm:$0xf] }
  0xd6   :  { %1412 = vmatmul.bf16.gmra.mxu3 %v3479_v61  ;;  %v1168_v62 = vpop.f32.mrf.mxu2  ;;  %1461 = vmatmul.bf16.gmra.mxu0 %v3591_v53  ;;  %v2969_v53 = vld [vmem:[%s4855_s0 + $0xa0] sm:$0xf0] }
  0xd7   :  { %v1169_v31 = vadd.f32 %v1168_v62, %v1120_v34  ;;  %v2263_v34 = vld [vmem:[%s4855_s0 + $0x88] sm:$0xf] }
  0xd8   :  { %v1121_v50 = vpop.f32.mrf.mxu1  ;;  %v4129_v62 = vor.u32 %v2969_v53, %v2263_v34 }
  0xd9   :  { %v1217_v15 = vpop.f32.mrf.mxu3  ;;  %v1122_v27 = vadd.f32 %v1121_v50, %v1073_v20  ;;  %v4127_v20 = vor.u32 %v2965_v3, %v2257_v29  ;;  %v2564_v3 = vor.u32 %v3043_v2, %v2561_v19  ;;  %v2285_v2 = vld [vmem:[%s4855_s0 + $0xd4] sm:$0xf0] }
  0xda   :  { %v1218_v60 = vadd.f32 %v1217_v15, %v1169_v31  ;;  %4886 = vst [vmem:[#allocation12_spill] sm:$0xff] %v4129_v62 }
  0xdb   :  { %v1268_v61 = vpop.f32.mrf.mxu0  ;;  %1501 = vmatpush.bf16.msrb.mxu1 %v2564_v3 }
  0xdc   :  { %v4111_v12 = vadd.f32 %v1266_v52, %v1218_v60 }
  0xde   :  { %v1170_v10 = vpop.f32.mrf.mxu2 }
  0xdf   :  { %v1171_v52 = vadd.f32 %v1170_v10, %v1122_v27 }
  0xe0   :  { %v1124_v31 = vpop.f32.mrf.mxu1 }
  0xe1   :  { %v1219_v13 = vpop.f32.mrf.mxu3  ;;  %v1125_v15 = vadd.f32 %v1124_v31, %v1076_v56 }
  0xe2   :  { %v1220_v50 = vadd.f32 %v1219_v13, %v1171_v52 }
  0xe3   :  { %1319 = vmatmul.bf16.gmra.mxu1 %v4127_v20  ;;  %1368 = vmatmul.bf16.gmra.mxu2 %v4129_v62  ;;  %v1271_v27 = vpop.f32.mrf.mxu0 }
  0xe4   :  { %v4131_v60 = vadd.f32 %v1268_v61, %v1220_v50  ;;  %v1078_v61 = vadd.f32 %v3982_v5, %v3970_v59  ;;  %v2291_v5 = vld [vmem:[%s4855_s0 + $0xc0] sm:$0xf]  ;;  %v1081_v50 = vadd.f32 %v4012_v38, %v3970_v59  ;;  %v2553_v38 = vld [vmem:[%s4854_s1 + $0x128] sm:$0xf0] }
  0xe6   :  { %1417 = vmatmul.bf16.gmra.mxu3 %v3306_v44  ;;  %v1173_v29 = vpop.f32.mrf.mxu2  ;;  %1466 = vmatmul.bf16.gmra.mxu0 %v3633_v6  ;;  %v2972_v44 = vld [vmem:[%s4855_s0 + $0xbc] sm:$0xf] }
  0xe7   :  { %v1174_v34 = vadd.f32 %v1173_v29, %v1125_v15  ;;  %v2976_v6 = vld [vmem:[%s4855_s0 + $0xd8] sm:$0xf0]  ;;  %v4161_v3 = vor.u32 %v2972_v44, %v2285_v2 }
  0xe8   :  { %v1126_v10 = vpop.f32.mrf.mxu1  ;;  %v4163_v29 = vor.u32 %v2976_v6, %v2291_v5 }
  0xe9   :  { %v1222_v53 = vpop.f32.mrf.mxu3  ;;  %v1127_v56 = vadd.f32 %v1126_v10, %v1078_v61 }
  0xea   :  { %v1223_v52 = vadd.f32 %v1222_v53, %v1174_v34  ;;  %4887 = vst [vmem:[#allocation13_spill] sm:$0xff] %v4163_v29 }
  0xeb   :  { %v1273_v31 = vpop.f32.mrf.mxu0 }
  0xec   :  { %v4145_v13 = vadd.f32 %v1271_v27, %v1223_v52  ;;  %v3041_v52 = vld [vmem:[%s4854_s1 + $0x124] sm:$0xf] }
  0xed   :  { %v2556_v44 = vor.u32 %v3041_v52, %v2553_v38 }
  0xee   :  { %v1175_v15 = vpop.f32.mrf.mxu2 }
  0xef   :  { %v1176_v19 = vadd.f32 %v1175_v15, %v1127_v56  ;;  %1502 = vmatpush.bf16.msrb.mxu1 %v2556_v44 }
  0xf0   :  { %v1129_v61 = vpop.f32.mrf.mxu1 }
  0xf1   :  { %v1224_v27 = vpop.f32.mrf.mxu3  ;;  %v1130_v34 = vadd.f32 %v1129_v61, %v1081_v50 }
  0xf2   :  { %v1225_v53 = vadd.f32 %v1224_v27, %v1176_v19 }
  0xf3   :  { %1324 = vmatmul.bf16.gmra.mxu1 %v4161_v3  ;;  %1373 = vmatmul.bf16.gmra.mxu2 %v4163_v29  ;;  %v1276_v56 = vpop.f32.mrf.mxu0 }
  0xf4   :  { %v4165_v10 = vadd.f32 %v1273_v31, %v1225_v53  ;;  %v1083_v31 = vadd.f32 %v4040_v24, %v3970_v59  ;;  %v2313_v53 = vld [vmem:[%s4855_s0 + $0x10c] sm:$0xf0]  ;;  %v2319_v59 = vld [vmem:[%s4855_s0 + $0xf8] sm:$0xf] }
  0xf6   :  { %1422 = vmatmul.bf16.gmra.mxu3 %v3438_v40  ;;  %v1178_v2 = vpop.f32.mrf.mxu2  ;;  %1471 = vmatmul.bf16.gmra.mxu0 %v3675_v21  ;;  %v2979_v40 = vld [vmem:[%s4855_s0 + $0xf4] sm:$0xf] }
  0xf7   :  { %v1179_v5 = vadd.f32 %v1178_v2, %v1130_v34  ;;  %v2983_v21 = vld [vmem:[%s4855_s0 + $0x110] sm:$0xf0]  ;;  %v4193_v38 = vor.u32 %v2979_v40, %v2313_v53 }
  0xf8   :  { %v1131_v15 = vpop.f32.mrf.mxu1  ;;  %v3083_v40 = vld [vmem:[%s4854_s1 + $0x274] sm:$0xf] }
  0xf9   :  { %v1227_v6 = vpop.f32.mrf.mxu3  ;;  %v1132_v50 = vadd.f32 %v1131_v15, %v1083_v31 }
  0xfa   :  { %v1228_v19 = vadd.f32 %v1227_v6, %v1179_v5  ;;  %v3067_v5 = vld [vmem:[%s4854_s1 + $0x1f4] sm:$0xf]  ;;  %v2657_v6 = vld [vmem:[%s4854_s1 + $0x1f8] sm:$0xf0] }
  0xfb   :  { %v1278_v61 = vpop.f32.mrf.mxu0  ;;  %v2660_v15 = vor.u32 %v3067_v5, %v2657_v6  ;;  %v3081_v5 = vld [vmem:[%s4854_s1 + $0x264] sm:$0xf]  ;;  %v2713_v6 = vld [vmem:[%s4854_s1 + $0x268] sm:$0xf0] }
  0xfc   :  { %v4179_v27 = vadd.f32 %v1276_v56, %v1228_v19  ;;  %v4195_v56 = vor.u32 %v2983_v21, %v2319_v59  ;;  %v2721_v59 = vld [vmem:[%s4854_s1 + $0x278] sm:$0xf0] }
  0xfd   :  { %1546 = vmatpush.bf16.msrb.mxu2 %v2660_v15  ;;  %v2724_v21 = vor.u32 %v3083_v40, %v2721_v59  ;;  %v2341_v59 = vld [vmem:[%s4855_s0 + $0x144] sm:$0xf0] }
  0xfe   :  { %v1180_v24 = vpop.f32.mrf.mxu2  ;;  %4888 = vst [vmem:[#allocation14_spill] sm:$0xff] %v4195_v56 }
  0xff   :  { %v1181_v34 = vadd.f32 %v1180_v24, %v1132_v50  ;;  %v2545_v50 = vld [vmem:[%s4854_s1 + $0x118] sm:$0xf0]  ;;  %v3065_v24 = vld [vmem:[%s4854_s1 + $0x1e4] sm:$0xf]  ;;  %1595 = vmatpush.bf16.msrb.mxu3 %v2724_v21 }
 0x100   :  { %v1134_v44 = vpop.f32.mrf.mxu1 }
 0x101   :  { %v1229_v52 = vpop.f32.mrf.mxu3  ;;  %v1135_v2 = vadd.f32 %v1134_v44, %v3973_v0  ;;  %v3039_v0 = vld [vmem:[%s4854_s1 + $0x114] sm:$0xf] }
 0x102   :  { %v1230_v31 = vadd.f32 %v1229_v52, %v1181_v34  ;;  %v2548_v53 = vor.u32 %v3039_v0, %v2545_v50  ;;  %v2649_v34 = vld [vmem:[%s4854_s1 + $0x1e8] sm:$0xf0]  ;;  %v2716_v0 = vor.u32 %v3081_v5, %v2713_v6  ;;  %v2785_v5 = vld [vmem:[%s4854_s1 + $0x2f8] sm:$0xf0] }
 0x103   :  { %1329 = vmatmul.bf16.gmra.mxu1 %v4193_v38  ;;  %1378 = vmatmul.bf16.gmra.mxu2 %v4195_v56  ;;  %v2652_v44 = vor.u32 %v3065_v24, %v2649_v34  ;;  %v2705_v34 = vld [vmem:[%s4854_s1 + $0x258] sm:$0xf0] }
 0x104   :  { %v4204_v19 = vadd.f32 %v1278_v61, %v1230_v31  ;;  %v1281_v61 = vpop.f32.mrf.mxu0  ;;  %1503 = vmatpush.bf16.msrb.mxu1 %v2548_v53  ;;  %v2986_v53 = vld [vmem:[%s4855_s0 + $0x12c] sm:$0xf]  ;;  %1596 = vmatpush.bf16.msrb.mxu3 %v2716_v0 }
 0x105   :  { %1547 = vmatpush.bf16.msrb.mxu2 %v2652_v44  ;;  %v2633_v0 = vld [vmem:[%s4854_s1 + $0x1c8] sm:$0xf0]  ;;  %v4273_v29 = vor.u32 %v2986_v53, %v2341_v59 }
 0x106   :  { %1427 = vmatmul.bf16.gmra.mxu3 %v3308_v45  ;;  %v1183_v52 = vpop.f32.mrf.mxu2  ;;  %1476 = vmatmul.bf16.gmra.mxu0 %v3717_v42  ;;  %v2641_v42 = vld [vmem:[%s4854_s1 + $0x1d8] sm:$0xf0]  ;;  %v2777_v53 = vld [vmem:[%s4854_s1 + $0x2e8] sm:$0xf0] }
 0x107   :  { %v1184_v45 = vadd.f32 %v1183_v52, %v1135_v2  ;;  %v3063_v2 = vld [vmem:[%s4854_s1 + $0x1d4] sm:$0xf] }
 0x108   :  { %v1136_v15 = vpop.f32.mrf.mxu1  ;;  %v2644_v21 = vor.u32 %v3063_v2, %v2641_v42  ;;  %v3099_v52 = vld [vmem:[%s4854_s1 + $0x2f4] sm:$0xf] }
 0x109   :  { %v1232_v31 = vpop.f32.mrf.mxu3  ;;  %v1137_v50 = vadd.f32 %v1136_v15, %v4006_v28  ;;  %v3079_v28 = vld [vmem:[%s4854_s1 + $0x254] sm:$0xf]  ;;  %v2788_v6 = vor.u32 %v3099_v52, %v2785_v5  ;;  %v3061_v15 = vld [vmem:[%s4854_s1 + $0x1c4] sm:$0xf] }
 0x10a   :  { %v1233_v40 = vadd.f32 %v1232_v31, %v1184_v45  ;;  %v2347_v45 = vld [vmem:[%s4855_s0 + $0x130] sm:$0xf]  ;;  %1548 = vmatpush.bf16.msrb.mxu2 %v2644_v21  ;;  %v2708_v31 = vor.u32 %v3079_v28, %v2705_v34  ;;  %v2636_v2 = vor.u32 %v3061_v15, %v2633_v0  ;;  %v3077_v28 = vld [vmem:[%s4854_s1 + $0x244] sm:$0xf]  ;;  %v2697_v34 = vld [vmem:[%s4854_s1 + $0x248] sm:$0xf0] }
 0x10b   :  { %1644 = vmatpush.bf16.msrb.mxu0 %v2788_v6  ;;  %v3097_v52 = vld [vmem:[%s4854_s1 + $0x2e4] sm:$0xf]  ;;  %v3059_v5 = vld [vmem:[%s4854_s1 + $0x1b4] sm:$0xf]  ;;  %v2625_v6 = vld [vmem:[%s4854_s1 + $0x1b8] sm:$0xf0] }
 0x10c   :  { %v4247_v24 = vadd.f32 %v1281_v61, %v1233_v40  ;;  %v1283_v44 = vpop.f32.mrf.mxu0  ;;  %v2990_v61 = vld [vmem:[%s4855_s0 + $0x148] sm:$0xf0]  ;;  %1597 = vmatpush.bf16.msrb.mxu3 %v2708_v31  ;;  %v2780_v31 = vor.u32 %v3097_v52, %v2777_v53  ;;  %v2628_v0 = vor.u32 %v3059_v5, %v2625_v6 }
 0x10d   :  { %v4275_v21 = vor.u32 %v2990_v61, %v2347_v45  ;;  %v2700_v61 = vor.u32 %v3077_v28, %v2697_v34  ;;  %v3095_v28 = vld [vmem:[%s4854_s1 + $0x2d4] sm:$0xf]  ;;  %v2769_v34 = vld [vmem:[%s4854_s1 + $0x2d8] sm:$0xf0]  ;;  %v2617_v53 = vld [vmem:[%s4854_s1 + $0x1a8] sm:$0xf0] }
 0x10e   :  { %v1185_v40 = vpop.f32.mrf.mxu2  ;;  %1549 = vmatpush.bf16.msrb.mxu2 %v2636_v2 }
 0x10f   :  { %v1186_v42 = vadd.f32 %v1185_v40, %v1137_v50  ;;  %4889 = vst [vmem:[#allocation15_spill] sm:$0xff] %v4275_v21  ;;  %v3075_v40 = vld [vmem:[%s4854_s1 + $0x234] sm:$0xf]  ;;  %1645 = vmatpush.bf16.msrb.mxu0 %v2780_v31 }
 0x110   :  { %v1139_v50 = vpop.f32.mrf.mxu1  ;;  %1598 = vmatpush.bf16.msrb.mxu3 %v2700_v61  ;;  %v3073_v61 = vld [vmem:[%s4854_s1 + $0x224] sm:$0xf] }
 0x111   :  { %v1234_v56 = vpop.f32.mrf.mxu3  ;;  %v1140_v59 = vadd.f32 %v1139_v50, %v4037_v17  ;;  %v3037_v17 = vld [vmem:[%s4854_s1 + $0x104] sm:$0xf]  ;;  %v2772_v50 = vor.u32 %v3095_v28, %v2769_v34  ;;  %v3055_v28 = vld [vmem:[%s4854_s1 + $0x194] sm:$0xf]  ;;  %v2609_v34 = vld [vmem:[%s4854_s1 + $0x198] sm:$0xf0] }
 0x112   :  { %v1235_v45 = vadd.f32 %v1234_v56, %v1186_v42  ;;  %v2537_v56 = vld [vmem:[%s4854_s1 + $0x108] sm:$0xf0]  ;;  %v2689_v42 = vld [vmem:[%s4854_s1 + $0x238] sm:$0xf0]  ;;  %1550 = vmatpush.bf16.msrb.mxu2 %v2628_v0 }
 0x113   :  { %1334 = vmatmul.bf16.gmra.mxu1 %v4273_v29  ;;  %1383 = vmatmul.bf16.gmra.mxu2 %v4275_v21  ;;  %v2540_v2 = vor.u32 %v3037_v17, %v2537_v56  ;;  %v2692_v52 = vor.u32 %v3075_v40, %v2689_v42  ;;  %v2681_v17 = vld [vmem:[%s4854_s1 + $0x228] sm:$0xf0]  ;;  %v3093_v56 = vld [vmem:[%s4854_s1 + $0x2c4] sm:$0xf] }
 0x114   :  { %v4296_v15 = vadd.f32 %v1283_v44, %v1235_v45  ;;  %v1286_v44 = vpop.f32.mrf.mxu0  ;;  %1646 = vmatpush.bf16.msrb.mxu0 %v2772_v50  ;;  %v2684_v40 = vor.u32 %v3073_v61, %v2681_v17  ;;  %v2993_v50 = vld [vmem:[%s4855_s0 + $0x164] sm:$0xf]  ;;  %v2753_v61 = vld [vmem:[%s4854_s1 + $0x2b8] sm:$0xf0] }
 0x115   :  { %1504 = vmatpush.bf16.msrb.mxu1 %v2540_v2  ;;  %1599 = vmatpush.bf16.msrb.mxu3 %v2692_v52 }
 0x116   :  { %1432 = vmatmul.bf16.gmra.mxu3 %v3440_v41  ;;  %v3057_v41 = vld [vmem:[%s4854_s1 + $0x1a4] sm:$0xf]  ;;  %v1188_v45 = vpop.f32.mrf.mxu2  ;;  %1481 = vmatmul.bf16.gmra.mxu0 %v3807_v39 }
 0x117   :  { %v2620_v31 = vor.u32 %v3057_v41, %v2617_v53  ;;  %v1189_v5 = vadd.f32 %v1188_v45, %v1140_v59  ;;  %v2761_v59 = vld [vmem:[%s4854_s1 + $0x2c8] sm:$0xf0]  ;;  %v2612_v41 = vor.u32 %v3055_v28, %v2609_v34  ;;  %v3071_v53 = vld [vmem:[%s4854_s1 + $0x214] sm:$0xf]  ;;  %v2673_v45 = vld [vmem:[%s4854_s1 + $0x218] sm:$0xf0] }
 0x118   :  { %v1141_v0 = vpop.f32.mrf.mxu1  ;;  %v2764_v42 = vor.u32 %v3093_v56, %v2761_v59  ;;  %v2676_v17 = vor.u32 %v3071_v53, %v2673_v45  ;;  %v2601_v59 = vld [vmem:[%s4854_s1 + $0x188] sm:$0xf0]  ;;  %v3089_v53 = vld [vmem:[%s4854_s1 + $0x2a4] sm:$0xf] }
 0x119   :  { %v1237_v6 = vpop.f32.mrf.mxu3  ;;  %v1142_v39 = vadd.f32 %v1141_v0, %v4059_v16  ;;  %1551 = vmatpush.bf16.msrb.mxu2 %v2620_v31  ;;  %v2369_v16 = vld [vmem:[%s4855_s0 + $0x17c] sm:$0xf0]  ;;  %v3091_v31 = vld [vmem:[%s4854_s1 + $0x2b4] sm:$0xf]  ;;  %1600 = vmatpush.bf16.msrb.mxu3 %v2684_v40  ;;  %v3053_v0 = vld [vmem:[%s4854_s1 + $0x184] sm:$0xf] }
 0x11a   :  { %v1238_v2 = vadd.f32 %v1237_v6, %v1189_v5  ;;  %v2375_v6 = vld [vmem:[%s4855_s0 + $0x168] sm:$0xf]  ;;  %1647 = vmatpush.bf16.msrb.mxu0 %v2764_v42  ;;  %v2756_v56 = vor.u32 %v3091_v31, %v2753_v61  ;;  %v2604_v28 = vor.u32 %v3053_v0, %v2601_v59  ;;  %v4377_v21 = vor.u32 %v2993_v50, %v2369_v16  ;;  %v3069_v40 = vld [vmem:[%s4854_s1 + $0x204] sm:$0xf]  ;;  %v2745_v50 = vld [vmem:[%s4854_s1 + $0x2a8] sm:$0xf0] }
 0x11b   :  { %v3115_v61 = vld [vmem:[%s4854_s1 + $0x374] sm:$0xf]  ;;  %v2737_v0 = vld [vmem:[%s4854_s1 + $0x298] sm:$0xf0] }
 0x11c   :  { %v4351_v52 = vadd.f32 %v1286_v44, %v1238_v2  ;;  %v1288_v5 = vpop.f32.mrf.mxu0  ;;  %v2997_v44 = vld [vmem:[%s4855_s0 + $0x180] sm:$0xf0] }
 0x11d   :  { %1552 = vmatpush.bf16.msrb.mxu2 %v2612_v41  ;;  %v4379_v62 = vor.u32 %v2997_v44, %v2375_v6  ;;  %v2665_v41 = vld [vmem:[%s4854_s1 + $0x208] sm:$0xf0]  ;;  %1601 = vmatpush.bf16.msrb.mxu3 %v2676_v17  ;;  %v2748_v6 = vor.u32 %v3089_v53, %v2745_v50 }
 0x11e   :  { %v1190_v2 = vpop.f32.mrf.mxu2  ;;  %1648 = vmatpush.bf16.msrb.mxu0 %v2756_v56  ;;  %v2849_v56 = vld [vmem:[%s4854_s1 + $0x378] sm:$0xf0] }
 0x11f   :  { %v1191_v34 = vadd.f32 %v1190_v2, %v1142_v39  ;;  %v2668_v39 = vor.u32 %v3069_v40, %v2665_v41  ;;  %v2852_v17 = vor.u32 %v3115_v61, %v2849_v56 }
 0x120   :  { %v1144_v45 = vpop.f32.mrf.mxu1 }
 0x121   :  { %v1239_v42 = vpop.f32.mrf.mxu3  ;;  %v1145_v16 = vadd.f32 %v1144_v45, %v3985_v9  ;;  %1553 = vmatpush.bf16.msrb.mxu2 %v2604_v28  ;;  %v3087_v9 = vld [vmem:[%s4854_s1 + $0x294] sm:$0xf]  ;;  %1602 = vmatpush.bf16.msrb.mxu3 %v2668_v39 }
 0x122   :  { %v1240_v31 = vadd.f32 %v1239_v42, %v1191_v34  ;;  %1649 = vmatpush.bf16.msrb.mxu0 %v2748_v6  ;;  %v2740_v59 = vor.u32 %v3087_v9, %v2737_v0  ;;  %1693 = vmatpush.bf16.msra.mxu1 %v2852_v17  ;;  %v3085_v42 = vld [vmem:[%s4854_s1 + $0x284] sm:$0xf] }
 0x123   :  { %1339 = vmatmul.bf16.gmra.mxu1 %v4377_v21  ;;  %1388 = vmatmul.bf16.gmra.mxu2 %v4379_v62 }
 0x124   :  { %v4394_v44 = vadd.f32 %v1288_v5, %v1240_v31  ;;  %v1291_v5 = vpop.f32.mrf.mxu0  ;;  %v2403_v31 = vld [vmem:[%s4855_s0 + $0x1a0] sm:$0xf] }
 0x126   :  { %1437 = vmatmul.bf16.gmra.mxu3 %v3319_v49  ;;  %v1193_v2 = vpop.f32.mrf.mxu2  ;;  %1486 = vmatmul.bf16.gmra.mxu0 %v3921_v14  ;;  %v2729_v49 = vld [vmem:[%s4854_s1 + $0x288] sm:$0xf0]  ;;  %v3000_v14 = vld [vmem:[%s4855_s0 + $0x19c] sm:$0xf] }
 0x127   :  { %v1194_v28 = vadd.f32 %v1193_v2, %v1145_v16  ;;  %1650 = vmatpush.bf16.msrb.mxu0 %v2740_v59  ;;  %v2732_v41 = vor.u32 %v3085_v42, %v2729_v49  ;;  %v2397_v16 = vld [vmem:[%s4855_s0 + $0x1b4] sm:$0xf0] }
 0x128   :  { %v1146_v40 = vpop.f32.mrf.mxu1  ;;  %v4433_v9 = vor.u32 %v3000_v14, %v2397_v16 }
 0x129   :  { %v1242_v34 = vpop.f32.mrf.mxu3  ;;  %v1147_v53 = vadd.f32 %v1146_v40, %v4015_v51  ;;  %v3004_v51 = vld [vmem:[%s4855_s0 + $0x1b8] sm:$0xf0] }
 0x12a   :  { %v1243_v45 = vadd.f32 %v1242_v34, %v1194_v28  ;;  %v3113_v28 = vld [vmem:[%s4854_s1 + $0x364] sm:$0xf]  ;;  %v2841_v34 = vld [vmem:[%s4854_s1 + $0x368] sm:$0xf0] }
 0x12b   :  { %1651 = vmatpush.bf16.msrb.mxu0 %v2732_v41  ;;  %v2844_v49 = vor.u32 %v3113_v28, %v2841_v34 }
 0x12c   :  { %v4419_v39 = vadd.f32 %v1291_v5, %v1243_v45  ;;  %v1293_v50 = vpop.f32.mrf.mxu0  ;;  %v4435_v5 = vor.u32 %v3004_v51, %v2403_v31 }
 0x12d   :  { %1694 = vmatpush.bf16.msra.mxu1 %v2844_v49 }
 0x12e   :  { %v1195_v6 = vpop.f32.mrf.mxu2 }
 0x12f   :  { %v1196_v61 = vadd.f32 %v1195_v6, %v1147_v53 }
 0x130   :  { %v1149_v17 = vpop.f32.mrf.mxu1 }
 0x131   :  { %v1244_v56 = vpop.f32.mrf.mxu3  ;;  %v1150_v0 = vadd.f32 %v1149_v17, %v4043_v25 }
 0x132   :  { %v1245_v59 = vadd.f32 %v1244_v56, %v1196_v61 }
 0x133   :  { %1344 = vmatmul.bf16.gmra.mxu1 %v4433_v9  ;;  %1393 = vmatmul.bf16.gmra.mxu2 %v4435_v5 }
 0x134   :  { %v4438_v2 = vadd.f32 %v1293_v50, %v1245_v59  ;;  %v1296_v42 = vpop.f32.mrf.mxu0 }
 0x136   :  { %1442 = vmatmul.bf16.gmra.mxu3 %v3451_v47  ;;  %v1198_v25 = vpop.f32.mrf.mxu2  ;;  %1491 = vmatmul.bf16.gmra.mxu0 %v4008_v35  ;;  %v3111_v35 = vld [vmem:[%s4854_s1 + $0x354] sm:$0xf] }
 0x137   :  { %v1199_v40 = vadd.f32 %v1198_v25, %v1150_v0  ;;  %v4466_v0 = vperm.slane %v3950_v30, 1 }
 0x138   :  { %v1151_v53 = vpop.f32.mrf.mxu1 }
 0x139   :  { %v1247_v41 = vpop.f32.mrf.mxu3  ;;  %v1152_v45 = vadd.f32 %v1151_v53, %v4066_v36  ;;  %v2833_v36 = vld [vmem:[%s4854_s1 + $0x358] sm:$0xf0] }
 0x13a   :  { %v1248_v14 = vadd.f32 %v1247_v41, %v1199_v40  ;;  %v2836_v59 = vor.u32 %v3111_v35, %v2833_v36 }
 0x13c   :  { %v4451_v50 = vadd.f32 %v1296_v42, %v1248_v14  ;;  %v1298_v16 = vpop.f32.mrf.mxu0  ;;  %1695 = vmatpush.bf16.msra.mxu1 %v2836_v59 }
 0x13e   :  { %v1200_v31 = vpop.f32.mrf.mxu2 }
 0x13f   :  { %v1201_v51 = vadd.f32 %v1200_v31, %v1152_v45 }
 0x140   :  { %v1310_v61 = vpop.f32.mrf.mxu1 }
 0x141   :  { %v1249_v6 = vpop.f32.mrf.mxu3  ;;  %v1311_v56 = vadd.f32 %v1310_v61, %v4079_v4 }
 0x142   :  { %v1250_v47 = vadd.f32 %v1249_v6, %v1201_v51  ;;  %v2825_v6 = vld [vmem:[%s4854_s1 + $0x348] sm:$0xf0] }
 0x143   :  { %1505 = vmatmul.bf16.vlgmr.msrb.gmra.mxu1 %v3551_v32  ;;  %1554 = vmatmul.bf16.vlgmr.msrb.gmra.mxu2 %v3553_v33 }
 0x144   :  { %v4454_v17 = vadd.f32 %v1298_v16, %v1250_v47  ;;  %v1457_v4 = vpop.f32.mrf.mxu0 }
 0x146   :  { %1603 = vmatmul.bf16.vlgmr.msrb.gmra.mxu3 %v3563_v37  ;;  %v1359_v28 = vpop.f32.mrf.mxu2  ;;  %1652 = vmatmul.bf16.vlgmr.msrb.gmra.mxu0 %v4061_v1 }
 0x147   :  { %v1360_v32 = vadd.f32 %v1359_v28, %v1311_v56 }
 0x148   :  { %v1312_v33 = vpop.f32.mrf.mxu1 }
 0x149   :  { %v1408_v34 = vpop.f32.mrf.mxu3  ;;  %v1313_v49 = vadd.f32 %v1312_v33, %v4098_v18  ;;  %v1742_v14 = vmax.f32 %v1360_v32, 0.0  ;;  %v3109_v18 = vld [vmem:[%s4854_s1 + $0x344] sm:$0xf] }
 0x14a   :  { %v1409_v42 = vadd.f32 %v1408_v34, %v4466_v0 }
 0x14c   :  { %v4471_v25 = vadd.f32 %v1457_v4, %v1409_v42  ;;  %v1459_v40 = vpop.f32.mrf.mxu0 }
 0x14e   :  { %v1361_v37 = vpop.f32.mrf.mxu2 }
 0x14f   :  { %v1362_v41 = vadd.f32 %v1361_v37, %v1313_v49 }
 0x150   :  { %v1315_v53 = vpop.f32.mrf.mxu1 }
 0x151   :  { %v1410_v30 = vpop.f32.mrf.mxu3  ;;  %v1744_v16 = vmax.f32 %v1362_v41, 0.0  ;;  %v1316_v31 = vadd.f32 %v1315_v53, %v4111_v12  ;;  %v2828_v12 = vor.u32 %v3109_v18, %v2825_v6 }
 0x152   :  { %v1411_v45 = vadd.f32 %v1410_v30, %v4466_v0 }
 0x153   :  { %v4477_v1 = vpack.c.bf16 %v1744_v16, %v1742_v14  ;;  %1510 = vmatmul.bf16.gmra.mxu1 %v3593_v54  ;;  %1559 = vmatmul.bf16.gmra.mxu2 %v3595_v55 }
 0x154   :  { %v4475_v51 = vadd.f32 %v1459_v40, %v1411_v45  ;;  %v1462_v61 = vpop.f32.mrf.mxu0  ;;  %1696 = vmatpush.bf16.msra.mxu1 %v2828_v12 }
 0x156   :  { %1608 = vmatmul.bf16.gmra.mxu3 %v3605_v58  ;;  %v1364_v47 = vpop.f32.mrf.mxu2  ;;  %1657 = vmatmul.bf16.gmra.mxu0 %v4094_v63  ;;  %v3107_v63 = vld [vmem:[%s4854_s1 + $0x334] sm:$0xf] }
 0x157   :  { %v1365_v56 = vadd.f32 %v1364_v47, %v1316_v31 }
 0x158   :  { %v1317_v54 = vpop.f32.mrf.mxu1 }
 0x159   :  { %v1413_v35 = vpop.f32.mrf.mxu3  ;;  %v1318_v36 = vadd.f32 %v1317_v54, %v4131_v60  ;;  %v1746_v42 = vmax.f32 %v1365_v56, 0.0  ;;  %v2817_v60 = vld [vmem:[%s4854_s1 + $0x338] sm:$0xf0] }
 0x15a   :  { %v1414_v55 = vadd.f32 %v1413_v35, %v4466_v0 }
 0x15c   :  { %v4491_v4 = vadd.f32 %v1462_v61, %v1414_v55  ;;  %v1464_v59 = vpop.f32.mrf.mxu0 }
 0x15e   :  { %v1366_v28 = vpop.f32.mrf.mxu2 }
 0x15f   :  { %v1367_v32 = vadd.f32 %v1366_v28, %v1318_v36 }
 0x160   :  { %v1320_v58 = vpop.f32.mrf.mxu1 }
 0x161   :  { %v1415_v34 = vpop.f32.mrf.mxu3  ;;  %v1748_v49 = vmax.f32 %v1367_v32, 0.0  ;;  %v1321_v40 = vadd.f32 %v1320_v58, %v4145_v13  ;;  %v2820_v13 = vor.u32 %v3107_v63, %v2817_v60 }
 0x162   :  { %v1416_v33 = vadd.f32 %v1415_v34, %v4466_v0 }
 0x163   :  { %1515 = vmatmul.bf16.gmra.mxu1 %v3635_v7  ;;  %1564 = vmatmul.bf16.gmra.mxu2 %v3637_v8  ;;  %v4505_v41 = vpack.c.bf16 %v1748_v49, %v1746_v42 }
 0x164   :  { %v4495_v37 = vadd.f32 %v1464_v59, %v1416_v33  ;;  %v1467_v30 = vpop.f32.mrf.mxu0  ;;  %1697 = vmatpush.bf16.msra.mxu1 %v2820_v13 }
 0x166   :  { %1613 = vmatmul.bf16.gmra.mxu3 %v3647_v11  ;;  %v1369_v53 = vpop.f32.mrf.mxu2  ;;  %1662 = vmatmul.bf16.gmra.mxu0 %v4127_v20  ;;  %v3105_v20 = vld [vmem:[%s4854_s1 + $0x324] sm:$0xf] }
 0x167   :  { %v1370_v45 = vadd.f32 %v1369_v53, %v1321_v40 }
 0x168   :  { %v1322_v8 = vpop.f32.mrf.mxu1 }
 0x169   :  { %v1418_v7 = vpop.f32.mrf.mxu3  ;;  %v1323_v16 = vadd.f32 %v1322_v8, %v4165_v10  ;;  %v1750_v56 = vmax.f32 %v1370_v45, 0.0  ;;  %v2809_v10 = vld [vmem:[%s4854_s1 + $0x328] sm:$0xf0] }
 0x16a   :  { %v1419_v14 = vadd.f32 %v1418_v7, %v4466_v0  ;;  %v2801_v7 = vld [vmem:[%s4854_s1 + $0x318] sm:$0xf0] }
 0x16c   :  { %v4511_v31 = vadd.f32 %v1467_v30, %v1419_v14  ;;  %v1469_v18 = vpop.f32.mrf.mxu0 }
 0x16e   :  { %v1371_v6 = vpop.f32.mrf.mxu2 }
 0x16f   :  { %v1372_v61 = vadd.f32 %v1371_v6, %v1323_v16 }
 0x170   :  { %v1325_v11 = vpop.f32.mrf.mxu1 }
 0x171   :  { %v1420_v12 = vpop.f32.mrf.mxu3  ;;  %v1752_v35 = vmax.f32 %v1372_v61, 0.0  ;;  %v1326_v54 = vadd.f32 %v1325_v11, %v4179_v27  ;;  %v2812_v27 = vor.u32 %v3105_v20, %v2809_v10  ;;  %v3122_v11 = vld [vmem:[%s4857_s3 + $0x28] sm:$0xff] }
 0x172   :  { %v1421_v47 = vadd.f32 %v1420_v12, %v4466_v0 }
 0x173   :  { %1520 = vmatmul.bf16.gmra.mxu1 %v3677_v22  ;;  %1569 = vmatmul.bf16.gmra.mxu2 %v3679_v23  ;;  %v4525_v36 = vpack.c.bf16 %v1752_v35, %v1750_v56 }
 0x174   :  { %v4515_v55 = vadd.f32 %v1469_v18, %v1421_v47  ;;  %v1472_v59 = vpop.f32.mrf.mxu0  ;;  %1698 = vmatpush.bf16.msra.mxu1 %v2812_v27  ;;  %v3120_v27 = vld [vmem:[%s4857_s3 + $0x18] sm:$0xff] }
 0x176   :  { %1618 = vmatmul.bf16.gmra.mxu3 %v3689_v26  ;;  %v1374_v28 = vpop.f32.mrf.mxu2  ;;  %1667 = vmatmul.bf16.gmra.mxu0 %v4161_v3  ;;  %v3124_v3 = vld [vmem:[%s4857_s3 + $0x38] sm:$0xff] }
 0x177   :  { %v1375_v32 = vadd.f32 %v1374_v28, %v1326_v54  ;;  %1922 = vmatpush.bf16.msra.mxu2 %v3124_v3  ;;  %v4890_v28 = vld [vmem:[#allocation2_spill] sm:$0xff] }
 0x178   :  { %v1327_v23 = vpop.f32.mrf.mxu1 }
 0x179   :  { %v1423_v22 = vpop.f32.mrf.mxu3  ;;  %v1328_v58 = vadd.f32 %v1327_v23, %v4204_v19  ;;  %v1754_v30 = vmax.f32 %v1375_v32, 0.0  ;;  %v3103_v19 = vld [vmem:[%s4854_s1 + $0x314] sm:$0xf]  ;;  %v3101_v32 = vld [vmem:[%s4854_s1 + $0x304] sm:$0xf] }
 0x17a   :  { %v1424_v34 = vadd.f32 %v1423_v22, %v4466_v0  ;;  %v2804_v14 = vor.u32 %v3103_v19, %v2801_v7  ;;  %v2793_v22 = vld [vmem:[%s4854_s1 + $0x308] sm:$0xf0] }
 0x17c   :  { %v4531_v33 = vadd.f32 %v1472_v59, %v1424_v34  ;;  %v1474_v42 = vpop.f32.mrf.mxu0  ;;  %1699 = vmatpush.bf16.msra.mxu1 %v2804_v14  ;;  %v4891_v34 = vld [vmem:[#allocation3_spill] sm:$0xff] }
 0x17e   :  { %v1376_v49 = vpop.f32.mrf.mxu2 }
 0x17f   :  { %v1377_v40 = vadd.f32 %v1376_v49, %v1328_v58  ;;  %v2796_v58 = vor.u32 %v3101_v32, %v2793_v22 }
 0x180   :  { %v1330_v26 = vpop.f32.mrf.mxu1 }
 0x181   :  { %v1425_v63 = vpop.f32.mrf.mxu3  ;;  %v1756_v13 = vmax.f32 %v1377_v40, 0.0  ;;  %v1331_v53 = vadd.f32 %v1330_v26, %v4247_v24  ;;  %1700 = vmatpush.bf16.msra.mxu1 %v2796_v58 }
 0x182   :  { %v1426_v60 = vadd.f32 %v1425_v63, %v4466_v0 }
 0x183   :  { %1525 = vmatmul.bf16.gmra.mxu1 %v3719_v43  ;;  %1574 = vmatmul.bf16.gmra.mxu2 %v3721_v46  ;;  %v4548_v8 = vpack.c.bf16 %v1756_v13, %v1754_v30  ;;  %v3123_v43 = vld [vmem:[%s4857_s3 + $0x30] sm:$0xff]  ;;  %v3118_v13 = vld [vmem:[%s4857_s3 + $0x8] sm:$0xff] }
 0x184   :  { %v4535_v45 = vadd.f32 %v1474_v42, %v1426_v60  ;;  %v1477_v24 = vpop.f32.mrf.mxu0  ;;  %1923 = vmatpush.bf16.msra.mxu2 %v3123_v43  ;;  %v4892_v43 = vld [vmem:[#allocation4_spill] sm:$0xff] }
 0x186   :  { %1623 = vmatmul.bf16.gmra.mxu3 %v3737_v57  ;;  %v1379_v16 = vpop.f32.mrf.mxu2  ;;  %1672 = vmatmul.bf16.gmra.mxu0 %v4193_v38  ;;  %v3121_v38 = vld [vmem:[%s4857_s3 + $0x20] sm:$0xff] }
 0x187   :  { %v1380_v46 = vadd.f32 %v1379_v16, %v1331_v53 }
 0x188   :  { %v1332_v6 = vpop.f32.mrf.mxu1  ;;  %1924 = vmatpush.bf16.msra.mxu2 %v3122_v11 }
 0x189   :  { %v1428_v18 = vpop.f32.mrf.mxu3  ;;  %v1333_v12 = vadd.f32 %v1332_v6, %v4296_v15  ;;  %v1758_v15 = vmax.f32 %v1380_v46, 0.0  ;;  %v4893_v46 = vld [vmem:[#allocation5_spill] sm:$0xff]  ;;  %v4894_v6 = vld [vmem:[#allocation6_spill] sm:$0xff] }
 0x18a   :  { %v1429_v61 = vadd.f32 %v1428_v18, %v4466_v0 }
 0x18c   :  { %v4557_v57 = vadd.f32 %v1477_v24, %v1429_v61  ;;  %v4562_v47 = vpop.f32.mrf.mxu0  ;;  %1925 = vmatpush.bf16.msra.mxu2 %v3121_v38 }
 0x18e   :  { %v1381_v56 = vpop.f32.mrf.mxu2 }
 0x18f   :  { %v1382_v35 = vadd.f32 %v1381_v56, %v1333_v12 }
 0x190   :  { %v1335_v20 = vpop.f32.mrf.mxu1  ;;  %1926 = vmatpush.bf16.msra.mxu2 %v3120_v27 }
 0x191   :  { %v4567_v54 = vpop.f32.mrf.mxu3  ;;  %v1760_v10 = vmax.f32 %v1382_v35, 0.0  ;;  %v1336_v59 = vadd.f32 %v1335_v20, %v4351_v52 }
 0x193   :  { %1530 = vmatmul.bf16.gmra.mxu1 %v3809_v48  ;;  %1579 = vmatmul.bf16.gmra.mxu2 %v4890_v28  ;;  %v4581_v23 = vpack.c.bf16 %v1760_v10, %v1758_v15  ;;  %v3119_v48 = vld [vmem:[%s4857_s3 + $0x10] sm:$0xff]  ;;  %v3132_v28 = vld [vmem:[%s4857_s3 + $0x78] sm:$0xff] }
 0x194   :  { %v1482_v52 = vpop.f32.mrf.mxu0  ;;  %1927 = vmatpush.bf16.msra.mxu2 %v3119_v48  ;;  %1971 = vmatpush.bf16.msra.mxu3 %v3132_v28 }
 0x196   :  { %1628 = vmatmul.bf16.gmra.mxu3 %v4891_v34  ;;  %v1384_v42 = vpop.f32.mrf.mxu2  ;;  %1677 = vmatmul.bf16.gmra.mxu0 %v4273_v29  ;;  %v3117_v29 = vld [vmem:[%s4857_s3] sm:$0xff] }
 0x197   :  { %v1385_v49 = vadd.f32 %v1384_v42, %v1336_v59  ;;  %v4897_v42 = vld [vmem:[#allocation9_spill] sm:$0xff] }
 0x198   :  { %v1337_v63 = vpop.f32.mrf.mxu1  ;;  %1928 = vmatpush.bf16.msra.mxu2 %v3118_v13 }
 0x199   :  { %v1433_v40 = vpop.f32.mrf.mxu3  ;;  %v1338_v60 = vadd.f32 %v1337_v63, %v4394_v44  ;;  %v1762_v44 = vmax.f32 %v1385_v49, 0.0 }
 0x19a   :  { %v1434_v26 = vadd.f32 %v1433_v40, %v4466_v0 }
 0x19c   :  { %v4590_v30 = vadd.f32 %v1482_v52, %v1434_v26  ;;  %v4595_v53 = vpop.f32.mrf.mxu0  ;;  %1929 = vmatpush.bf16.msra.mxu2 %v3117_v29  ;;  %v4895_v52 = vld [vmem:[#allocation7_spill] sm:$0xff] }
 0x19e   :  { %v1386_v3 = vpop.f32.mrf.mxu2 }
 0x19f   :  { %v1387_v19 = vadd.f32 %v1386_v3, %v1338_v60 }
 0x1a0   :  { %v1340_v24 = vpop.f32.mrf.mxu1 }
 0x1a1   :  { %v4600_v7 = vpop.f32.mrf.mxu3  ;;  %v1764_v14 = vmax.f32 %v1387_v19, 0.0  ;;  %v1341_v16 = vadd.f32 %v1340_v24, %v4419_v39  ;;  %v3131_v19 = vld [vmem:[%s4857_s3 + $0x70] sm:$0xff] }
 0x1a2   :  { %1972 = vmatpush.bf16.msra.mxu3 %v3131_v19 }
 0x1a3   :  { %1535 = vmatmul.bf16.gmra.mxu1 %v4892_v43  ;;  %1584 = vmatmul.bf16.gmra.mxu2 %v4893_v46  ;;  %v4605_v18 = vpack.c.bf16 %v1764_v14, %v1762_v44 }
 0x1a4   :  { %v1487_v61 = vpop.f32.mrf.mxu0 }
 0x1a6   :  { %1633 = vmatmul.bf16.gmra.mxu3 %v4894_v6  ;;  %v1389_v12 = vpop.f32.mrf.mxu2  ;;  %1682 = vmatmul.bf16.gmra.mxu0 %v4377_v21 }
 0x1a7   :  { %v1390_v11 = vadd.f32 %v1389_v12, %v1341_v16 }
 0x1a8   :  { %v1342_v38 = vpop.f32.mrf.mxu1 }
 0x1a9   :  { %v1438_v56 = vpop.f32.mrf.mxu3  ;;  %v1343_v20 = vadd.f32 %v1342_v38, %v4438_v2  ;;  %v1766_v22 = vmax.f32 %v1390_v11, 0.0  ;;  %v4896_v2 = vld [vmem:[#allocation8_spill] sm:$0xff] }
 0x1aa   :  { %v1439_v35 = vadd.f32 %v1438_v56, %v4466_v0 }
 0x1ac   :  { %v4611_v39 = vadd.f32 %v1487_v61, %v1439_v35  ;;  %v4615_v27 = vpop.f32.mrf.mxu0 }
 0x1ae   :  { %v1391_v15 = vpop.f32.mrf.mxu2 }
 0x1af   :  { %v1392_v10 = vadd.f32 %v1391_v15, %v1343_v20 }
 0x1b0   :  { %v1345_v32 = vpop.f32.mrf.mxu1 }
 0x1b1   :  { %v4613_v59 = vpop.f32.mrf.mxu3  ;;  %v1768_v21 = vmax.f32 %v1392_v10, 0.0  ;;  %v1346_v34 = vadd.f32 %v1345_v32, %v4451_v50  ;;  %v3129_v10 = vld [vmem:[%s4857_s3 + $0x60] sm:$0xff]  ;;  %v4900_v32 = vld [vmem:[#allocation12_spill] sm:$0xff] }
 0x1b3   :  { %1540 = vmatmul.bf16.gmra.mxu1 %v4895_v52  ;;  %1589 = vmatmul.bf16.gmra.mxu2 %v4896_v2  ;;  %v4623_v58 = vpack.c.bf16 %v1768_v21, %v1766_v22  ;;  %v3128_v52 = vld [vmem:[%s4857_s3 + $0x58] sm:$0xff] }
 0x1b4   :  { %v1492_v50 = vpop.f32.mrf.mxu0 }
 0x1b6   :  { %1638 = vmatmul.bf16.gmra.mxu3 %v4897_v42  ;;  %v1394_v48 = vpop.f32.mrf.mxu2  ;;  %1687 = vmatmul.bf16.gmra.mxu0 %v4433_v9  ;;  %v4898_v9 = vld [vmem:[#allocation10_spill] sm:$0xff]  ;;  %v4901_v42 = vld [vmem:[#allocation13_spill] sm:$0xff] }
 0x1b7   :  { %v1395_v49 = vadd.f32 %v1394_v48, %v1346_v34 }
 0x1b8   :  { %v1347_v63 = vpop.f32.mrf.mxu1 }
 0x1b9   :  { %v1443_v40 = vpop.f32.mrf.mxu3  ;;  %v1348_v60 = vadd.f32 %v1347_v63, %v4454_v17  ;;  %v1770_v44 = vmax.f32 %v1395_v49, 0.0 }
 0x1ba   :  { %v1444_v26 = vadd.f32 %v1443_v40, %v4466_v0  ;;  %v3127_v40 = vld [vmem:[%s4857_s3 + $0x50] sm:$0xff] }
 0x1bc   :  { %v4629_v13 = vadd.f32 %v1492_v50, %v1444_v26 }
 0x1be   :  { %v1396_v3 = vpop.f32.mrf.mxu2 }
 0x1bf   :  { %v1397_v29 = vadd.f32 %v1396_v3, %v1348_v60 }
 0x1c0   :  { %v1506_v24 = vpop.f32.mrf.mxu1 }
 0x1c1   :  { %v1772_v14 = vmax.f32 %v1397_v29, 0.0  ;;  %v1507_v16 = vadd.f32 %v1506_v24, %v4471_v25  ;;  %v3130_v25 = vld [vmem:[%s4857_s3 + $0x68] sm:$0xff]  ;;  %v4693_v60 = vpop.f32.mrf.mxu3  ;;  %v4703_v29 = vpop.f32.mrf.mxu0 }
 0x1c2   :  { %1973 = vmatpush.bf16.msra.mxu3 %v3130_v25 }
 0x1c3   :  { %1701 = vmatmul.bf16.vlgmr.msra.gmra.mxu1 %v4898_v9  ;;  %1930 = vmatmul.bf16.vlgmr.msra.gmra.mxu2 %v4477_v1  ;;  %v4637_v17 = vpack.c.bf16 %v1772_v14, %v1770_v44  ;;  %v4899_v1 = vld [vmem:[#allocation11_spill] sm:$0xff]  ;;  %v3125_v44 = vld [vmem:[%s4857_s3 + $0x40] sm:$0xff] }
 0x1c6   :  { %v1555_v43 = vpop.f32.mrf.mxu2  ;;  %1974 = vmatpush.bf16.msra.mxu3 %v3129_v10 }
 0x1c7   :  { %v4639_v46 = vadd.f32 %v1555_v43, %v1507_v16 }
 0x1c8   :  { %v1508_v6 = vpop.f32.mrf.mxu1 }
 0x1c9   :  { %v4642_v61 = vadd.f32 %v1508_v6, %v4475_v51  ;;  %v1604_v19 = vpop.f32.mrf.mxu3  ;;  %v1653_v24 = vpop.f32.mrf.mxu0 }
 0x1ca   :  { %1975 = vmatpush.bf16.msra.mxu3 %v3128_v52 }
 0x1ce   :  { %v4644_v12 = vpop.f32.mrf.mxu2  ;;  %1976 = vmatpush.bf16.msra.mxu3 %v3127_v40  ;;  %v3139_v40 = vld [vmem:[%s4859_s5 + $0x30] sm:$0xff] }
 0x1d0   :  { %v1511_v11 = vpop.f32.mrf.mxu1 }
 0x1d1   :  { %v1512_v56 = vadd.f32 %v1511_v11, %v4491_v4 }
 0x1d3   :  { %1706 = vmatmul.bf16.gmra.mxu1 %v4899_v1  ;;  %1935 = vmatmul.bf16.gmra.mxu2 %v4505_v41 }
 0x1d6   :  { %v1560_v38 = vpop.f32.mrf.mxu2 }
 0x1d7   :  { %v4652_v35 = vadd.f32 %v1560_v38, %v1512_v56 }
 0x1d8   :  { %v1513_v20 = vpop.f32.mrf.mxu1 }
 0x1d9   :  { %v4655_v51 = vadd.f32 %v1513_v20, %v4495_v37  ;;  %v1605_v20 = vadd.f32 %v1604_v19, %v4639_v46 }
 0x1de   :  { %v4657_v15 = vpop.f32.mrf.mxu2 }
 0x1df   :  { %v1563_v46 = vadd.f32 %v4657_v15, %v4655_v51 }
 0x1e0   :  { %v1516_v28 = vpop.f32.mrf.mxu1 }
 0x1e1   :  { %v1517_v4 = vadd.f32 %v1516_v28, %v4511_v31  ;;  %v3140_v28 = vld [vmem:[%s4859_s5 + $0x38] sm:$0xff] }
 0x1e2   :  { %2112 = vmatpush.bf16.msra.mxu0 %v3140_v28 }
 0x1e3   :  { %1711 = vmatmul.bf16.gmra.mxu1 %v4900_v32  ;;  %1940 = vmatmul.bf16.gmra.mxu2 %v4525_v36 }
 0x1e6   :  { %v1565_v41 = vpop.f32.mrf.mxu2  ;;  %2113 = vmatpush.bf16.msra.mxu0 %v3139_v40 }
 0x1e7   :  { %v4665_v22 = vadd.f32 %v1565_v41, %v1517_v4  ;;  %v1654_v4 = vadd.f32 %v1653_v24, %v1605_v20 }
 0x1e8   :  { %v1518_v21 = vpop.f32.mrf.mxu1 }
 0x1e9   :  { %v4668_v37 = vadd.f32 %v1518_v21, %v4515_v55 }
 0x1ee   :  { %v4670_v34 = vpop.f32.mrf.mxu2 }
 0x1f0   :  { %v1521_v2 = vpop.f32.mrf.mxu1 }
 0x1f1   :  { %v1522_v31 = vadd.f32 %v1521_v2, %v4531_v33  ;;  %v4902_v33 = vld [vmem:[#allocation14_spill] sm:$0xff] }
 0x1f3   :  { %1716 = vmatmul.bf16.gmra.mxu1 %v4901_v42  ;;  %1945 = vmatmul.bf16.gmra.mxu2 %v4548_v8 }
 0x1f6   :  { %v1570_v36 = vpop.f32.mrf.mxu2 }
 0x1f7   :  { %v4678_v48 = vadd.f32 %v1570_v36, %v1522_v31 }
 0x1f8   :  { %v1523_v49 = vpop.f32.mrf.mxu1 }
 0x1f9   :  { %v4681_v55 = vadd.f32 %v1523_v49, %v4535_v45  ;;  %v3126_v45 = vld [vmem:[%s4857_s3 + $0x48] sm:$0xff] }
 0x1fa   :  { %1977 = vmatpush.bf16.msra.mxu3 %v3126_v45 }
 0x1fe   :  { %1978 = vmatpush.bf16.msra.mxu3 %v3125_v44  ;;  %v4720_v56 = vpop.f32.mrf.mxu2 }
 0x200   :  { %v1526_v63 = vpop.f32.mrf.mxu1 }
 0x201   :  { %v4687_v26 = vadd.f32 %v1526_v63, %v4557_v57  ;;  %v4903_v57 = vld [vmem:[#allocation15_spill] sm:$0xff] }
 0x203   :  { %1721 = vmatmul.bf16.gmra.mxu1 %v4902_v33  ;;  %1950 = vmatmul.bf16.gmra.mxu2 %v4581_v23 }
 0x208   :  { %v4691_v8 = vpop.f32.mrf.mxu1 }
 0x210   :  { %v1531_v50 = vpop.f32.mrf.mxu1 }
 0x211   :  { %v4699_v3 = vadd.f32 %v1531_v50, %v4590_v30  ;;  %v1606_v30 = vpop.f32.mrf.mxu3 }
 0x213   :  { %1726 = vmatmul.bf16.gmra.mxu1 %v4903_v57  ;;  %1955 = vmatmul.bf16.gmra.mxu2 %v4605_v18  ;;  %v1655_v18 = vpop.f32.mrf.mxu0 }
 0x218   :  { %v4705_v23 = vpop.f32.mrf.mxu1 }
 0x219   :  { %v1609_v43 = vpop.f32.mrf.mxu3 }
 0x21a   :  { %v1610_v36 = vadd.f32 %v1609_v43, %v4652_v35 }
 0x21b   :  { %v1658_v11 = vpop.f32.mrf.mxu0 }
 0x21c   :  { %v1659_v63 = vadd.f32 %v1658_v11, %v1610_v36  ;;  %v3138_v11 = vld [vmem:[%s4859_s5 + $0x28] sm:$0xff] }
 0x21d   :  { %2114 = vmatpush.bf16.msra.mxu0 %v3138_v11 }
 0x220   :  { %v1536_v14 = vpop.f32.mrf.mxu1 }
 0x221   :  { %v4711_v16 = vadd.f32 %v1536_v14, %v4611_v39  ;;  %v1611_v39 = vpop.f32.mrf.mxu3  ;;  %v1568_v14 = vadd.f32 %v4670_v34, %v4668_v37 }
 0x222   :  { %v1612_v49 = vadd.f32 %v1611_v39, %v1563_v46 }
 0x223   :  { %1731 = vmatmul.bf16.gmra.mxu1 %v4379_v62  ;;  %1960 = vmatmul.bf16.gmra.mxu2 %v4623_v58  ;;  %v1660_v62 = vpop.f32.mrf.mxu0  ;;  %v1558_v58 = vadd.f32 %v4644_v12, %v4642_v61 }
 0x224   :  { %v1661_v45 = vadd.f32 %v1660_v62, %v1612_v49 }
 0x228   :  { %v4715_v9 = vpop.f32.mrf.mxu1 }
 0x229   :  { %v1614_v10 = vpop.f32.mrf.mxu3 }
 0x22a   :  { %v1615_v43 = vadd.f32 %v1614_v10, %v4665_v22  ;;  %v1573_v22 = vadd.f32 %v4720_v56, %v4681_v55 }
 0x230   :  { %v1541_v6 = vpop.f32.mrf.mxu1 }
 0x231   :  { %v4718_v25 = vadd.f32 %v1541_v6, %v4629_v13  ;;  %v1607_v13 = vadd.f32 %v1606_v30, %v1558_v58  ;;  %v1616_v52 = vpop.f32.mrf.mxu3  ;;  %v1575_v30 = vpop.f32.mrf.mxu2 }
 0x232   :  { %v1617_v6 = vadd.f32 %v1616_v52, %v1568_v14  ;;  %v3137_v52 = vld [vmem:[%s4859_s5 + $0x20] sm:$0xff]  ;;  %v1576_v40 = vadd.f32 %v1575_v30, %v4687_v26  ;;  %v1436_v26 = vadd.f32 %v4600_v7, %v4466_v0 }
 0x233   :  { %1736 = vmatmul.bf16.gmra.mxu1 %v4435_v5  ;;  %1965 = vmatmul.bf16.gmra.mxu2 %v4637_v17  ;;  %v1663_v5 = vpop.f32.mrf.mxu0  ;;  %v1656_v17 = vadd.f32 %v1655_v18, %v1607_v13 }
 0x234   :  { %v1664_v62 = vadd.f32 %v1663_v5, %v1615_v43  ;;  %2115 = vmatpush.bf16.msra.mxu0 %v3137_v52  ;;  %v1485_v43 = vadd.f32 %v4595_v53, %v1436_v26 }
 0x238   :  { %v4724_v1 = vpop.f32.mrf.mxu1 }
 0x239   :  { %v1619_v33 = vpop.f32.mrf.mxu3  ;;  %v1577_v37 = vpop.f32.mrf.mxu2 }
 0x23b   :  { %v1665_v12 = vpop.f32.mrf.mxu0 }
 0x23c   :  { %v1666_v58 = vadd.f32 %v1665_v12, %v1617_v6 }
 0x240   :  { %v1702_v38 = vpop.f32.mrf.mxu1 }
 0x241   :  { %v1703_v32 = vadd.f32 %v1702_v38, %v1654_v4  ;;  %v1621_v35 = vpop.f32.mrf.mxu3 }
 0x243   :  { %v1743_v2 = vmax.f32 %v1703_v32, 0.0  ;;  %v1668_v24 = vpop.f32.mrf.mxu0 }
 0x248   :  { %v1704_v41 = vpop.f32.mrf.mxu1 }
 0x249   :  { %v1705_v21 = vadd.f32 %v1704_v41, %v1656_v17  ;;  %v1624_v13 = vpop.f32.mrf.mxu3  ;;  %v1620_v41 = vadd.f32 %v1619_v33, %v4678_v48 }
 0x24b   :  { %v1745_v31 = vmax.f32 %v1705_v21, 0.0  ;;  %v1670_v39 = vpop.f32.mrf.mxu0  ;;  %v1622_v21 = vadd.f32 %v1621_v35, %v1573_v22 }
 0x24d   :  { %v1775_v61 = vpack.c.bf16 %v1745_v31, %v1743_v2  ;;  %v1580_v2 = vpop.f32.mrf.mxu2  ;;  %v1669_v31 = vadd.f32 %v1668_v24, %v1620_v41  ;;  %v1671_v46 = vadd.f32 %v1670_v39, %v1622_v21 }
 0x24f   :  { %1979 = vmatmul.bf16.vlgmr.msra.gmra.mxu3 %v1775_v61  ;;  %v1431_v61 = vadd.f32 %v4567_v54, %v4466_v0  ;;  %v1625_v54 = vadd.f32 %v1624_v13, %v1576_v40 }
 0x250   :  { %v1707_v42 = vpop.f32.mrf.mxu1 }
 0x251   :  { %v1708_v50 = vadd.f32 %v1707_v42, %v1659_v63  ;;  %v1626_v5 = vpop.f32.mrf.mxu3  ;;  %v1480_v36 = vadd.f32 %v4562_v47, %v1431_v61 }
 0x253   :  { %v1747_v44 = vmax.f32 %v1708_v50, 0.0  ;;  %v1673_v32 = vpop.f32.mrf.mxu0  ;;  %v1529_v63 = vadd.f32 %v4691_v8, %v1480_v36 }
 0x254   :  { %v1674_v47 = vadd.f32 %v1673_v32, %v1625_v54 }
 0x255   :  { %v1582_v50 = vpop.f32.mrf.mxu2 }
 0x258   :  { %v1709_v57 = vpop.f32.mrf.mxu1 }
 0x259   :  { %v1710_v19 = vadd.f32 %v1709_v57, %v1661_v45  ;;  %v1629_v33 = vpop.f32.mrf.mxu3  ;;  %v1578_v57 = vadd.f32 %v1577_v37, %v1529_v63 }
 0x25b   :  { %v1749_v51 = vmax.f32 %v1710_v19, 0.0  ;;  %v1675_v42 = vpop.f32.mrf.mxu0 }
 0x25d   :  { %v1777_v15 = vpack.c.bf16 %v1749_v51, %v1747_v44  ;;  %v1627_v44 = vadd.f32 %v1626_v5, %v1578_v57  ;;  %v3136_v51 = vld [vmem:[%s4859_s5 + $0x18] sm:$0xff]  ;;  %v1585_v35 = vpop.f32.mrf.mxu2 }
 0x25e   :  { %2116 = vmatpush.bf16.msra.mxu0 %v3136_v51 }
 0x25f   :  { %1984 = vmatmul.bf16.gmra.mxu3 %v1777_v15  ;;  %v1676_v15 = vadd.f32 %v1675_v42, %v1627_v44 }
 0x260   :  { %v1712_v18 = vpop.f32.mrf.mxu1 }
 0x261   :  { %v1713_v38 = vadd.f32 %v1712_v18, %v1664_v62  ;;  %v1631_v8 = vpop.f32.mrf.mxu3  ;;  %v1581_v62 = vadd.f32 %v1580_v2, %v4699_v3  ;;  %v1441_v3 = vadd.f32 %v4613_v59, %v4466_v0  ;;  %v3134_v59 = vld [vmem:[%s4859_s5 + $0x8] sm:$0xff] }
 0x263   :  { %v1751_v34 = vmax.f32 %v1713_v38, 0.0  ;;  %v1678_v24 = vpop.f32.mrf.mxu0  ;;  %v1630_v7 = vadd.f32 %v1629_v33, %v1581_v62  ;;  %v1490_v41 = vadd.f32 %v4615_v27, %v1441_v3  ;;  %v3133_v27 = vld [vmem:[%s4859_s5] sm:$0xff] }
 0x265   :  { %v1587_v37 = vpop.f32.mrf.mxu2  ;;  %v1679_v53 = vadd.f32 %v1678_v24, %v1630_v7  ;;  %v1539_v61 = vadd.f32 %v4715_v9, %v1490_v41 }
 0x268   :  { %v1714_v20 = vpop.f32.mrf.mxu1 }
 0x269   :  { %v1715_v28 = vadd.f32 %v1714_v20, %v1666_v58  ;;  %v1534_v58 = vadd.f32 %v4705_v23, %v1485_v43 }
 0x26b   :  { %v1753_v4 = vmax.f32 %v1715_v28, 0.0  ;;  %v1680_v39 = vpop.f32.mrf.mxu0  ;;  %v1583_v20 = vadd.f32 %v1582_v50, %v1534_v58  ;;  %v1634_v28 = vpop.f32.mrf.mxu3 }
 0x26d   :  { %v1779_v17 = vpack.c.bf16 %v1753_v4, %v1751_v34  ;;  %v1632_v34 = vadd.f32 %v1631_v8, %v1583_v20  ;;  %v3135_v4 = vld [vmem:[%s4859_s5 + $0x10] sm:$0xff]  ;;  %v1590_v2 = vpop.f32.mrf.mxu2 }
 0x26e   :  { %2117 = vmatpush.bf16.msra.mxu0 %v3135_v4  ;;  %v1591_v24 = vadd.f32 %v1590_v2, %v4718_v25 }
 0x26f   :  { %1989 = vmatmul.bf16.gmra.mxu3 %v1779_v17  ;;  %v1681_v32 = vadd.f32 %v1680_v39, %v1632_v34 }
 0x270   :  { %v1717_v10 = vpop.f32.mrf.mxu1 }
 0x271   :  { %v1718_v12 = vadd.f32 %v1717_v10, %v1669_v31  ;;  %v1586_v31 = vadd.f32 %v1585_v35, %v4711_v16 }
 0x272   :  { %2118 = vmatpush.bf16.msra.mxu0 %v3134_v59 }
 0x273   :  { %v1755_v48 = vmax.f32 %v1718_v12, 0.0  ;;  %v1683_v17 = vpop.f32.mrf.mxu0  ;;  %v1636_v21 = vpop.f32.mrf.mxu3  ;;  %v1588_v12 = vadd.f32 %v1587_v37, %v1539_v61 }
 0x275   :  { %v1637_v36 = vadd.f32 %v1636_v21, %v1588_v12  ;;  %v1592_v9 = vpop.f32.mrf.mxu2 }
 0x276   :  { %2119 = vmatpush.bf16.msra.mxu0 %v3133_v27 }
 0x278   :  { %v1719_v55 = vpop.f32.mrf.mxu1 }
 0x279   :  { %v1720_v56 = vadd.f32 %v1719_v55, %v1671_v46 }
 0x27b   :  { %v1757_v49 = vmax.f32 %v1720_v56, 0.0  ;;  %v1685_v42 = vpop.f32.mrf.mxu0  ;;  %v1635_v56 = vadd.f32 %v1634_v28, %v1586_v31  ;;  %v1639_v16 = vpop.f32.mrf.mxu3 }
 0x27c   :  { %v1686_v40 = vadd.f32 %v1685_v42, %v1637_v36 }
 0x27d   :  { %v1781_v45 = vpack.c.bf16 %v1757_v49, %v1755_v48  ;;  %v1684_v48 = vadd.f32 %v1683_v17, %v1635_v56  ;;  %v1446_v49 = vadd.f32 %v4693_v60, %v4466_v0  ;;  %v1640_v0 = vadd.f32 %v1639_v16, %v1591_v24 }
 0x27f   :  { %1994 = vmatmul.bf16.gmra.mxu3 %v1781_v45  ;;  %v1495_v57 = vadd.f32 %v4703_v29, %v1446_v49 }
 0x280   :  { %v1722_v19 = vpop.f32.mrf.mxu1 }
 0x281   :  { %v1723_v14 = vadd.f32 %v1722_v19, %v1674_v47  ;;  %v1544_v44 = vadd.f32 %v4724_v1, %v1495_v57 }
 0x283   :  { %v1759_v6 = vmax.f32 %v1723_v14, 0.0  ;;  %v1688_v50 = vpop.f32.mrf.mxu0  ;;  %v1593_v47 = vadd.f32 %v1592_v9, %v1544_v44  ;;  %v1641_v26 = vpop.f32.mrf.mxu3 }
 0x284   :  { %v1689_v35 = vadd.f32 %v1688_v50, %v1640_v0 }
 0x285   :  { %v1642_v60 = vadd.f32 %v1641_v26, %v1593_v47 }
 0x288   :  { %v1724_v30 = vpop.f32.mrf.mxu1 }
 0x289   :  { %v1725_v18 = vadd.f32 %v1724_v30, %v1676_v15  ;;  %v1931_v15 = vpop.f32.mrf.mxu2 }
 0x28b   :  { %v1761_v11 = vmax.f32 %v1725_v18, 0.0  ;;  %v1690_v14 = vpop.f32.mrf.mxu0 }
 0x28c   :  { %v1691_v30 = vadd.f32 %v1690_v14, %v1642_v60 }
 0x28d   :  { %v1783_v38 = vpack.c.bf16 %v1761_v11, %v1759_v6 }
 0x28f   :  { %1999 = vmatmul.bf16.gmra.mxu3 %v1783_v38  ;;  %v4785_v38 = vld [vmem:[%s4858_s4] ss:$0 sm:$0xff] }
 0x290   :  { %v1727_v13 = vpop.f32.mrf.mxu1  ;;  %v1932_v20 = vadd.f32 %v4785_v38, %v1931_v15 }
 0x291   :  { %v1728_v23 = vadd.f32 %v1727_v13, %v1679_v53  ;;  %v1933_v6 = vpop.f32.mrf.mxu2 }
 0x292   :  { %v1934_v7 = vadd.f32 %v4785_v38, %v1933_v6 }
 0x293   :  { %v1763_v5 = vmax.f32 %v1728_v23, 0.0 }
 0x298   :  { %v1729_v22 = vpop.f32.mrf.mxu1 }
 0x299   :  { %v1730_v10 = vadd.f32 %v1729_v22, %v1681_v32  ;;  %v1936_v1 = vpop.f32.mrf.mxu2 }
 0x29a   :  { %v1937_v23 = vadd.f32 %v4785_v38, %v1936_v1 }
 0x29b   :  { %v1765_v52 = vmax.f32 %v1730_v10, 0.0 }
 0x29d   :  { %v1785_v46 = vpack.c.bf16 %v1765_v52, %v1763_v5 }
 0x29f   :  { %2004 = vmatmul.bf16.gmra.mxu3 %v1785_v46 }
 0x2a0   :  { %v1732_v55 = vpop.f32.mrf.mxu1 }
 0x2a1   :  { %v1733_v63 = vadd.f32 %v1732_v55, %v1684_v48  ;;  %v1938_v62 = vpop.f32.mrf.mxu2 }
 0x2a2   :  { %v1939_v22 = vadd.f32 %v4785_v38, %v1938_v62 }
 0x2a3   :  { %v1767_v19 = vmax.f32 %v1733_v63, 0.0 }
 0x2a8   :  { %v1734_v33 = vpop.f32.mrf.mxu1 }
 0x2a9   :  { %v1735_v45 = vadd.f32 %v1734_v33, %v1686_v40  ;;  %v1941_v13 = vpop.f32.mrf.mxu2 }
 0x2aa   :  { %v1942_v12 = vadd.f32 %v4785_v38, %v1941_v13 }
 0x2ab   :  { %v1769_v54 = vmax.f32 %v1735_v45, 0.0 }
 0x2ad   :  { %v1787_v51 = vpack.c.bf16 %v1769_v54, %v1767_v19 }
 0x2af   :  { %2009 = vmatmul.bf16.gmra.mxu3 %v1787_v51 }
 0x2b0   :  { %v1737_v8 = vpop.f32.mrf.mxu1 }
 0x2b1   :  { %v1738_v18 = vadd.f32 %v1737_v8, %v1689_v35  ;;  %v1943_v3 = vpop.f32.mrf.mxu2 }
 0x2b2   :  { %v1944_v59 = vadd.f32 %v4785_v38, %v1943_v3 }
 0x2b3   :  { %v1771_v11 = vmax.f32 %v1738_v18, 0.0 }
 0x2b8   :  { %v1739_v43 = vpop.f32.mrf.mxu1 }
 0x2b9   :  { %v1740_v29 = vadd.f32 %v1739_v43, %v1691_v30  ;;  %v1946_v5 = vpop.f32.mrf.mxu2 }
 0x2ba   :  { %v1947_v49 = vadd.f32 %v4785_v38, %v1946_v5 }
 0x2bb   :  { %v1773_v39 = vmax.f32 %v1740_v29, 0.0 }
 0x2bd   :  { %v1789_v25 = vpack.c.bf16 %v1773_v39, %v1771_v11 }
 0x2bf   :  { %2014 = vmatmul.bf16.gmra.mxu3 %v1789_v25 }
 0x2c1   :  { %v1948_v46 = vpop.f32.mrf.mxu2 }
 0x2c2   :  { %v1949_v40 = vadd.f32 %v4785_v38, %v1948_v46 }
 0x2c9   :  { %v1951_v16 = vpop.f32.mrf.mxu2 }
 0x2ca   :  { %v1952_v51 = vadd.f32 %v4785_v38, %v1951_v16 }
 0x2d1   :  { %v1953_v33 = vpop.f32.mrf.mxu2 }
 0x2d2   :  { %v1980_v58 = vpop.f32.mrf.mxu3  ;;  %v1954_v47 = vadd.f32 %v4785_v38, %v1953_v33 }
 0x2d3   :  { %v1981_v28 = vadd.f32 %v1980_v58, %v1932_v20 }
 0x2d5   :  { %v2020_v4 = vmax.f32 %v1981_v28, 0.0 }
 0x2d9   :  { %v1956_v44 = vpop.f32.mrf.mxu2 }
 0x2da   :  { %v1982_v37 = vpop.f32.mrf.mxu3  ;;  %v1957_v18 = vadd.f32 %v4785_v38, %v1956_v44 }
 0x2db   :  { %v1983_v34 = vadd.f32 %v1982_v37, %v1934_v7 }
 0x2dd   :  { %v2021_v53 = vmax.f32 %v1983_v34, 0.0 }
 0x2df   :  { %v2036_v17 = vpack.c.bf16 %v2021_v53, %v2020_v4 }
 0x2e1   :  { %2120 = vmatmul.bf16.vlgmr.msra.gmra.mxu0 %v2036_v17  ;;  %v1958_v14 = vpop.f32.mrf.mxu2 }
 0x2e2   :  { %v1985_v32 = vpop.f32.mrf.mxu3  ;;  %v1959_v29 = vadd.f32 %v4785_v38, %v1958_v14 }
 0x2e3   :  { %v1986_v10 = vadd.f32 %v1985_v32, %v1937_v23 }
 0x2e5   :  { %v2022_v52 = vmax.f32 %v1986_v10, 0.0 }
 0x2e9   :  { %v1961_v43 = vpop.f32.mrf.mxu2 }
 0x2ea   :  { %v1987_v41 = vpop.f32.mrf.mxu3  ;;  %v1962_v13 = vadd.f32 %v4785_v38, %v1961_v43 }
 0x2eb   :  { %v1988_v21 = vadd.f32 %v1987_v41, %v1939_v22 }
 0x2ed   :  { %v2023_v2 = vmax.f32 %v1988_v21, 0.0 }
 0x2ef   :  { %v2037_v31 = vpack.c.bf16 %v2023_v2, %v2022_v52 }
 0x2f1   :  { %2125 = vmatmul.bf16.gmra.mxu0 %v2037_v31  ;;  %v1963_v58 = vpop.f32.mrf.mxu2 }
 0x2f2   :  { %v1990_v61 = vpop.f32.mrf.mxu3  ;;  %v1964_v7 = vadd.f32 %v4785_v38, %v1963_v58 }
 0x2f3   :  { %v1991_v42 = vadd.f32 %v1990_v61, %v1942_v12  ;;  %v3166_v61 = vld [vmem:[%s4860_s6] ss:$0 sm:$0xff] }
 0x2f5   :  { %v2024_v27 = vmax.f32 %v1991_v42, 0.0 }
 0x2f9   :  { %v1966_v4 = vpop.f32.mrf.mxu2 }
 0x2fa   :  { %v1992_v55 = vpop.f32.mrf.mxu3  ;;  %v1967_v22 = vadd.f32 %v4785_v38, %v1966_v4 }
 0x2fb   :  { %v1993_v56 = vadd.f32 %v1992_v55, %v1944_v59 }
 0x2fd   :  { %v2025_v36 = vmax.f32 %v1993_v56, 0.0 }
 0x2ff   :  { %v2038_v48 = vpack.c.bf16 %v2025_v36, %v2024_v27 }
 0x301   :  { %2130 = vmatmul.bf16.gmra.mxu0 %v2038_v48  ;;  %v1968_v23 = vpop.f32.mrf.mxu2 }
 0x302   :  { %v1995_v9 = vpop.f32.mrf.mxu3  ;;  %v1969_v10 = vadd.f32 %v4785_v38, %v1968_v23 }
 0x303   :  { %v1996_v63 = vadd.f32 %v1995_v9, %v1947_v49 }
 0x305   :  { %v2026_v57 = vmax.f32 %v1996_v63, 0.0 }
 0x30a   :  { %v1997_v45 = vpop.f32.mrf.mxu3 }
 0x30b   :  { %v1998_v50 = vadd.f32 %v1997_v45, %v1949_v40 }
 0x30d   :  { %v2027_v19 = vmax.f32 %v1998_v50, 0.0 }
 0x30f   :  { %v2039_v54 = vpack.c.bf16 %v2027_v19, %v2026_v57 }
 0x311   :  { %2135 = vmatmul.bf16.gmra.mxu0 %v2039_v54 }
 0x312   :  { %v2000_v24 = vpop.f32.mrf.mxu3 }
 0x313   :  { %v2001_v26 = vadd.f32 %v2000_v24, %v1952_v51 }
 0x315   :  { %v2028_v0 = vmax.f32 %v2001_v26, 0.0 }
 0x31a   :  { %v2002_v15 = vpop.f32.mrf.mxu3 }
 0x31b   :  { %v2003_v8 = vadd.f32 %v2002_v15, %v1954_v47 }
 0x31d   :  { %v2029_v60 = vmax.f32 %v2003_v8, 0.0 }
 0x31f   :  { %v2040_v35 = vpack.c.bf16 %v2029_v60, %v2028_v0 }
 0x321   :  { %2140 = vmatmul.bf16.gmra.mxu0 %v2040_v35 }
 0x322   :  { %v2005_v30 = vpop.f32.mrf.mxu3 }
 0x323   :  { %v2006_v6 = vadd.f32 %v2005_v30, %v1957_v18 }
 0x325   :  { %v2030_v25 = vmax.f32 %v2006_v6, 0.0 }
 0x32a   :  { %v2007_v11 = vpop.f32.mrf.mxu3 }
 0x32b   :  { %v2008_v39 = vadd.f32 %v2007_v11, %v1959_v29 }
 0x32d   :  { %v2031_v1 = vmax.f32 %v2008_v39, 0.0 }
 0x32f   :  { %v2041_v62 = vpack.c.bf16 %v2031_v1, %v2030_v25 }
 0x331   :  { %2145 = vmatmul.bf16.gmra.mxu0 %v2041_v62 }
 0x332   :  { %v2010_v20 = vpop.f32.mrf.mxu3 }
 0x333   :  { %v2011_v28 = vadd.f32 %v2010_v20, %v1962_v13 }
 0x335   :  { %v2032_v53 = vmax.f32 %v2011_v28, 0.0 }
 0x33a   :  { %v2012_v37 = vpop.f32.mrf.mxu3 }
 0x33b   :  { %v2013_v34 = vadd.f32 %v2012_v37, %v1964_v7 }
 0x33d   :  { %v2033_v17 = vmax.f32 %v2013_v34, 0.0 }
 0x33f   :  { %v2042_v3 = vpack.c.bf16 %v2033_v17, %v2032_v53 }
 0x341   :  { %2150 = vmatmul.bf16.gmra.mxu0 %v2042_v3 }
 0x342   :  { %v2015_v32 = vpop.f32.mrf.mxu3 }
 0x343   :  { %v2016_v41 = vadd.f32 %v2015_v32, %v1967_v22 }
 0x345   :  { %v2034_v52 = vmax.f32 %v2016_v41, 0.0 }
 0x34a   :  { %v2017_v21 = vpop.f32.mrf.mxu3 }
 0x34b   :  { %v2018_v5 = vadd.f32 %v2017_v21, %v1969_v10 }
 0x34d   :  { %v2035_v2 = vmax.f32 %v2018_v5, 0.0 }
 0x34f   :  { %v2043_v31 = vpack.c.bf16 %v2035_v2, %v2034_v52 }
 0x351   :  { %2155 = vmatmul.bf16.gmra.mxu0 %v2043_v31 }
 0x35e   :  { %v2121_v46 = vpop.f32.mrf.mxu0 }
 0x35f   :  { %v2122_v12 = vadd.f32 %v3166_v61, %v2121_v46 }
 0x361   :  { %2161 = vst [vmem:[%s4861_s7] sm:$0xff] %v2122_v12 }
 0x366   :  { %v2123_v59 = vpop.f32.mrf.mxu0 }
 0x367   :  { %v2124_v42 = vadd.f32 %v3166_v61, %v2123_v59 }
 0x369   :  { %2162 = vst [vmem:[%s4861_s7 + $0x8] sm:$0xff] %v2124_v42 }
 0x36e   :  { %v2126_v38 = vpop.f32.mrf.mxu0 }
 0x36f   :  { %v2127_v55 = vadd.f32 %v3166_v61, %v2126_v38 }
 0x371   :  { %2163 = vst [vmem:[%s4861_s7 + $0x10] sm:$0xff] %v2127_v55 }
 0x376   :  { %v2128_v56 = vpop.f32.mrf.mxu0 }
 0x377   :  { %v2129_v27 = vadd.f32 %v3166_v61, %v2128_v56 }
 0x379   :  { %2164 = vst [vmem:[%s4861_s7 + $0x18] sm:$0xff] %v2129_v27 }
 0x37e   :  { %v2131_v36 = vpop.f32.mrf.mxu0 }
 0x37f   :  { %v2132_v48 = vadd.f32 %v3166_v61, %v2131_v36 }
 0x381   :  { %2165 = vst [vmem:[%s4861_s7 + $0x20] sm:$0xff] %v2132_v48 }
 0x386   :  { %v2133_v16 = vpop.f32.mrf.mxu0 }
 0x387   :  { %v2134_v9 = vadd.f32 %v3166_v61, %v2133_v16 }
 0x389   :  { %2166 = vst [vmem:[%s4861_s7 + $0x28] sm:$0xff] %v2134_v9 }
 0x38e   :  { %v2136_v49 = vpop.f32.mrf.mxu0 }
 0x38f   :  { %v2137_v40 = vadd.f32 %v3166_v61, %v2136_v49 }
 0x391   :  { %2167 = vst [vmem:[%s4861_s7 + $0x30] sm:$0xff] %v2137_v40 }
 0x396   :  { %v2138_v63 = vpop.f32.mrf.mxu0 }
 0x397   :  { %v2139_v33 = vadd.f32 %v3166_v61, %v2138_v63 }
 0x399   :  { %2168 = vst [vmem:[%s4861_s7 + $0x38] sm:$0xff] %v2139_v33 }
 0x39e   :  { %v2141_v45 = vpop.f32.mrf.mxu0 }
 0x39f   :  { %v2142_v50 = vadd.f32 %v3166_v61, %v2141_v45 }
 0x3a1   :  { %2169 = vst [vmem:[%s4861_s7 + $0x40] sm:$0xff] %v2142_v50 }
 0x3a6   :  { %v2143_v57 = vpop.f32.mrf.mxu0 }
 0x3a7   :  { %v2144_v19 = vadd.f32 %v3166_v61, %v2143_v57 }
 0x3a9   :  { %2170 = vst [vmem:[%s4861_s7 + $0x48] sm:$0xff] %v2144_v19 }
 0x3ae   :  { %v2146_v54 = vpop.f32.mrf.mxu0 }
 0x3af   :  { %v2147_v24 = vadd.f32 %v3166_v61, %v2146_v54 }
 0x3b1   :  { %2171 = vst [vmem:[%s4861_s7 + $0x50] sm:$0xff] %v2147_v24 }
 0x3b6   :  { %v2148_v44 = vpop.f32.mrf.mxu0 }
 0x3b7   :  { %v2149_v51 = vadd.f32 %v3166_v61, %v2148_v44 }
 0x3b9   :  { %2172 = vst [vmem:[%s4861_s7 + $0x58] sm:$0xff] %v2149_v51 }
 0x3be   :  { %v2151_v47 = vpop.f32.mrf.mxu0 }
 0x3bf   :  { %v2152_v26 = vadd.f32 %v3166_v61, %v2151_v47 }
 0x3c1   :  { %2173 = vst [vmem:[%s4861_s7 + $0x60] sm:$0xff] %v2152_v26 }
 0x3c6   :  { %v2153_v15 = vpop.f32.mrf.mxu0 }
 0x3c7   :  { %v2154_v8 = vadd.f32 %v3166_v61, %v2153_v15 }
 0x3c9   :  { %2174 = vst [vmem:[%s4861_s7 + $0x68] sm:$0xff] %v2154_v8 }
 0x3ce   :  { %v2156_v0 = vpop.f32.mrf.mxu0 }
 0x3cf   :  { %v2157_v60 = vadd.f32 %v3166_v61, %v2156_v0 }
 0x3d1   :  { %2175 = vst [vmem:[%s4861_s7 + $0x70] sm:$0xff] %v2157_v60 }
 0x3d6   :  { %v2158_v14 = vpop.f32.mrf.mxu0 }
 0x3d7   :  { %v2159_v35 = vadd.f32 %v3166_v61, %v2158_v14 }
 0x3d9   :  { %2176 = vst [vmem:[%s4861_s7 + $0x78] sm:$0xff] %v2159_v35 }

</bundles_post_ra>
